<compile_context>
chip_gen: v7x
topology: tpu7x:2x2x1
jax: 0.10.0
libtpu: 0.0.40
codegen_flags: <defaults>
</compile_context>

<pallas_src>
import jax
import jax.numpy as jnp
from jax.experimental import pallas as pl
from jax.experimental.pallas import tpu as pltpu

_LANE = 128          # lane width: last-dim multiples of 128 -> unmasked stores
_NEG_INF = -1e30     # bias padding for the final layer's fake logit columns


def _round_up(x, m):
    return ((x + m - 1) // m) * m


def _make_mlp_kernel(num_layers, out_offsets, use_bf16_matmul):
    """Kernel ref order: (x, w0, w1, ..., w_{L-1}, bias_cat, out)."""
    mm_dtype = jnp.bfloat16 if use_bf16_matmul else jnp.float32

    def kernel(x_ref, *refs):
        out_ref = refs[-1]
        bias_ref = refs[-2]
        h = x_ref[...]                                        # (tile, in_dim) f32
        for l in range(num_layers):
            w = refs[l][...]                                  # (k_l, out_pad_l), bf16 at rest
            o0, o1 = out_offsets[l], out_offsets[l + 1]
            b = bias_ref[:, o0:o1].astype(jnp.float32)        # static, lane-aligned slice
            # bf16 operands on the MXU, f32 accumulation.
            acc = jnp.dot(h.astype(mm_dtype), w, preferred_element_type=jnp.float32)
            h = acc + b                                       # f32
            if l < num_layers - 1:
                h = jnp.maximum(h, 0.0)                       # ReLU in f32
                if use_bf16_matmul:
                    h = h.astype(mm_dtype)                    # bf16 inter-layer activations
        # Numerically stable softmax (f32); padded logits carry a -1e30 bias,
        # so exp() == 0 and they do not perturb the denominator.
        m = jnp.max(h, axis=-1, keepdims=True)
        e = jnp.exp(h - m)
        denom = jnp.sum(e, axis=-1, keepdims=True)
        out_ref[...] = (e * pl.reciprocal(denom, approx=True)).astype(out_ref.dtype)

    return kernel


def nn_fully_connected_forward(x, weights, biases, *, batch_tile=None,
                               use_bf16_matmul=True,
                               single_buffer_constants=True,
                               vmem_limit_bytes=None):
    """Fused MLP + softmax forward pass.

    x       : (B, sizes[0]) float32
    weights : list of (sizes[i], sizes[i+1]) float32   (x @ W + b convention)
    biases  : list of (1, sizes[i+1]) float32
    returns : (B, sizes[-1]) float32 softmax probabilities
    """
    num_layers = len(weights)
    B, in_dim = x.shape
    out_dim = weights[-1].shape[1]

    # ---- feature dims: pad every layer OUTPUT to a lane multiple (128); x's
    #      contraction dim stays unpadded (MXU pads K internally).
    pdims = [in_dim] + [_round_up(w.shape[1], _LANE) for w in weights]
    out_pad = pdims[-1]

    # ---- batch tile: 256 floor, grow with B, never (much) beyond B ---------
    if batch_tile is None:
        if B >= 4096:
            batch_tile = 1024
        elif B >= 1024:
            batch_tile = 512
        else:
            batch_tile = 256
    tile = max(8, min(_round_up(batch_tile, 8), _round_up(B, 8)))
    num_steps = pl.cdiv(B, tile)      # ragged last block is masked by Pallas

    x32 = x.astype(jnp.float32)

    w_dtype = jnp.bfloat16 if use_bf16_matmul else jnp.float32
    weights_p, bias_chunks = [], []
    for l, (w, b) in enumerate(zip(weights, biases)):
        in_l, out_l = w.shape
        wp = jnp.zeros((pdims[l], pdims[l + 1]), jnp.float32)
        wp = wp.at[:in_l, :out_l].set(w.astype(jnp.float32))
        weights_p.append(wp.astype(w_dtype))
        # hidden layers: pad bias with 0 (padded features stay exactly 0 after
        # ReLU and their outgoing weight rows are 0).  final layer: -1e30.
        pad_val = 0.0 if l < num_layers - 1 else _NEG_INF
        bp = jnp.full((1, pdims[l + 1]), pad_val, jnp.float32)
        bp = bp.at[0, :out_l].set(b.reshape(-1).astype(jnp.float32))
        bias_chunks.append(bp)
    bias_cat = jnp.concatenate(bias_chunks, axis=-1)          # (1, sum(out_pad))

    out_offsets = [0]
    for l in range(num_layers):
        out_offsets.append(out_offsets[-1] + pdims[l + 1])

    kernel = _make_mlp_kernel(num_layers, tuple(out_offsets), use_bf16_matmul)

    # ---- VMEM budget: resident weights + bias + x/out double buffers +
    #      intermediates, with margin, capped below physical capacity.
    itemsize = 2 if use_bf16_matmul else 4
    weight_bytes = sum(int(wp.size) * itemsize for wp in weights_p)
    bias_bytes = int(bias_cat.size) * 4
    io_bytes = 2 * tile * (pdims[0] + out_pad) * 4            # double-buffered x/out tiles
    interm_bytes = 4 * tile * max(pdims) * 4                  # live intermediates (rough)
    need = (weight_bytes * (1 if single_buffer_constants else 2)
            + bias_bytes + io_bytes + interm_bytes)
    try:
        vmem_cap = pltpu.get_tpu_info().vmem_capacity_bytes
    except Exception:
        vmem_cap = 64 * 1024 * 1024                           # v7x per-TC (smallest)
    if vmem_limit_bytes is None:
        vmem_limit_bytes = int(min(max(2 * need, 16 * 1024 * 1024), 0.75 * vmem_cap))

    # ---- cost estimate: lets XLA overlap the wrapper cast/slice ops ---------
    flops = 2 * B * sum(pdims[l] * pdims[l + 1] for l in range(num_layers))
    cost = pl.CostEstimate(
        flops=int(flops),
        transcendentals=int(B * out_pad),
        bytes_accessed=int(x32.size * 4 + weight_bytes + bias_bytes + B * out_pad * 4),
    )

    def build(single_buffer):
        const_kw = dict(pipeline_mode=pl.Buffered(1)) if single_buffer else {}
        # x / out tiled over batch; weights & bias use a constant index_map so
        # they stay VMEM-resident across grid steps (no re-DMA).
        in_specs = [pl.BlockSpec((tile, pdims[0]), lambda i: (i, 0))]
        for wp in weights_p:
            in_specs.append(pl.BlockSpec(wp.shape, lambda i: (0, 0), **const_kw))
        in_specs.append(pl.BlockSpec(bias_cat.shape, lambda i: (0, 0), **const_kw))
        grid_spec = pltpu.PrefetchScalarGridSpec(
            num_scalar_prefetch=0,
            grid=(num_steps,),
            in_specs=in_specs,
            out_specs=pl.BlockSpec((tile, out_pad), lambda i: (i, 0)),
        )
        return pl.pallas_call(
            kernel,
            out_shape=jax.ShapeDtypeStruct((B, out_pad), jnp.float32),
            grid_spec=grid_spec,
            compiler_params=pltpu.CompilerParams(
                # TODO(synk): on v7x use pltpu.CORE_PARALLEL on the batch axis
                # (with >=4 steps per TC) for explicit megacore sharding.
                dimension_semantics=("parallel",),
                vmem_limit_bytes=vmem_limit_bytes,
            ),
            cost_estimate=cost,
        )

    try:
        out_padded = build(single_buffer_constants)(x32, *weights_p, bias_cat)
    except Exception:
        if not single_buffer_constants:
            raise
        # Compatibility guard: if pipeline_mode=Buffered(1) is rejected by this
        # JAX build, retry with default (double) buffering for the constants.
        out_padded = build(False)(x32, *weights_p, bias_cat)

    return out_padded[:, :out_dim]


def init_params(sizes, key):
    """Deterministic init mimicking PyTorch Linear default U(-1/sqrt(in), 1/sqrt(in))."""
    weights, biases = [], []
    for i in range(len(sizes) - 1):
        fan_in, fan_out = sizes[i], sizes[i + 1]
        key, kw, kb = jax.random.split(key, 3)
        bound = 1.0 / jnp.sqrt(fan_in)
        w = jax.random.uniform(kw, (fan_in, fan_out), jnp.float32, -bound, bound)
        b = jax.random.uniform(kb, (1, fan_out), jnp.float32, -bound, bound)
        weights.append(w)
        biases.append(b)
    return weights, biases


def reference_forward(x, weights, biases):
    h = x
    for l, (w, b) in enumerate(zip(weights, biases)):
        h = h @ w + b
        if l < len(weights) - 1:
            h = jnp.maximum(h, 0.0)
    return jax.nn.softmax(h, axis=-1)


if __name__ == "__main__":
    # sizes ~ [obs_dim, hidden, hidden, n_actions]
    sizes = [16, 32, 32, 8]
    batch = 500          # deliberately NOT a multiple of the tile:
                         # exercises the ragged last block (no wrapper batch pad)

    key = jax.random.PRNGKey(0)
    key, kx = jax.random.split(key)
    x = jax.random.normal(kx, (batch, sizes[0]), jnp.float32)
    weights, biases = init_params(sizes, key)

    out = nn_fully_connected_forward(x, weights, biases)   # auto tile=256 -> 2 grid steps
    out = jax.block_until_ready(out)

    ref = reference_forward(x, weights, biases)
    assert out.shape == (batch, sizes[-1])
    # tolerances loosened for bf16 MXU operands/activations + approx reciprocal
    assert jnp.allclose(jnp.sum(out, axis=-1), 1.0, atol=5e-3)
    assert jnp.allclose(out, ref, atol=2e-2, rtol=2e-2)

    print("KERNEL_OK")
</pallas_src>

<mosaic_0001>
module attributes {stable_mosaic.version = 11 : i64} {
  func.func @kernel(%arg0: i32, %arg1: memref<256x16xf32, #tpu.memory_space<vmem>>, %arg2: memref<16x128xbf16, #tpu.memory_space<vmem>>, %arg3: memref<128x128xbf16, #tpu.memory_space<vmem>>, %arg4: memref<128x128xbf16, #tpu.memory_space<vmem>>, %arg5: memref<1x384xf32, #tpu.memory_space<vmem>>, %arg6: memref<256x128xf32, #tpu.memory_space<vmem>>) attributes {dimension_semantics = [#tpu.dimension_semantics<parallel>], iteration_bounds = array<i64: 2>, scalar_prefetch = 0 : i64, scratch_operands = 0 : i64, tpu.core_type = #tpu.core_type<tc>, window_params = [{transform_indices = @transform_0, window_bounds = array<i64: 256, 16>}, {pipeline_mode = #tpu.pipeline_mode<synchronous>, transform_indices = @transform_1, window_bounds = array<i64: 16, 128>}, {pipeline_mode = #tpu.pipeline_mode<synchronous>, transform_indices = @transform_2, window_bounds = array<i64: 128, 128>}, {pipeline_mode = #tpu.pipeline_mode<synchronous>, transform_indices = @transform_3, window_bounds = array<i64: 128, 128>}, {pipeline_mode = #tpu.pipeline_mode<synchronous>, transform_indices = @transform_4, window_bounds = array<i64: 1, 384>}, {transform_indices = @transform_5, window_bounds = array<i64: 256, 128>}]} {
    %c0 = arith.constant 0 : index
    %c0_0 = arith.constant 0 : index
    %0 = vector.load %arg1[%c0, %c0_0] : memref<256x16xf32, #tpu.memory_space<vmem>>, vector<256x16xf32>
    %c0_1 = arith.constant 0 : index
    %c0_2 = arith.constant 0 : index
    %1 = vector.load %arg2[%c0_1, %c0_2] : memref<16x128xbf16, #tpu.memory_space<vmem>>, vector<16x128xbf16>
    %c0_3 = arith.constant 0 : index
    %c0_4 = arith.constant 0 : index
    %2 = vector.load %arg5[%c0_3, %c0_4] : memref<1x384xf32, #tpu.memory_space<vmem>>, vector<1x128xf32>
    %3 = arith.truncf %0 : vector<256x16xf32> to vector<256x16xbf16>
    %cst = arith.constant dense<0.000000e+00> : vector<256x128xf32>
    %4 = tpu.matmul %3, %1, %cst {dimension_numbers = #tpu.dot_dimension_numbers<[1], [0], [0], [1], [0, 0, 1, 1], [], []>} : vector<256x16xbf16>, vector<16x128xbf16>, vector<256x128xf32> -> vector<256x128xf32>
    %5 = vector.broadcast %2 : vector<1x128xf32> to vector<256x128xf32>
    %6 = arith.addf %4, %5 : vector<256x128xf32>
    %cst_5 = arith.constant 0.000000e+00 : f32
    %7 = vector.broadcast %cst_5 : f32 to vector<256x128xf32>
    %8 = arith.maximumf %6, %7 : vector<256x128xf32>
    %9 = arith.truncf %8 : vector<256x128xf32> to vector<256x128xbf16>
    %c0_6 = arith.constant 0 : index
    %c0_7 = arith.constant 0 : index
    %10 = vector.load %arg3[%c0_6, %c0_7] : memref<128x128xbf16, #tpu.memory_space<vmem>>, vector<128x128xbf16>
    %c0_8 = arith.constant 0 : index
    %c128 = arith.constant 128 : index
    %11 = vector.load %arg5[%c0_8, %c128] : memref<1x384xf32, #tpu.memory_space<vmem>>, vector<1x128xf32>
    %cst_9 = arith.constant dense<0.000000e+00> : vector<256x128xf32>
    %12 = tpu.matmul %9, %10, %cst_9 {dimension_numbers = #tpu.dot_dimension_numbers<[1], [0], [0], [1], [0, 0, 1, 1], [], []>} : vector<256x128xbf16>, vector<128x128xbf16>, vector<256x128xf32> -> vector<256x128xf32>
    %13 = vector.broadcast %11 : vector<1x128xf32> to vector<256x128xf32>
    %14 = arith.addf %12, %13 : vector<256x128xf32>
    %cst_10 = arith.constant 0.000000e+00 : f32
    %15 = vector.broadcast %cst_10 : f32 to vector<256x128xf32>
    %16 = arith.maximumf %14, %15 : vector<256x128xf32>
    %17 = arith.truncf %16 : vector<256x128xf32> to vector<256x128xbf16>
    %c0_11 = arith.constant 0 : index
    %c0_12 = arith.constant 0 : index
    %18 = vector.load %arg4[%c0_11, %c0_12] : memref<128x128xbf16, #tpu.memory_space<vmem>>, vector<128x128xbf16>
    %c0_13 = arith.constant 0 : index
    %c256 = arith.constant 256 : index
    %19 = vector.load %arg5[%c0_13, %c256] : memref<1x384xf32, #tpu.memory_space<vmem>>, vector<1x128xf32>
    %cst_14 = arith.constant dense<0.000000e+00> : vector<256x128xf32>
    %20 = tpu.matmul %17, %18, %cst_14 {dimension_numbers = #tpu.dot_dimension_numbers<[1], [0], [0], [1], [0, 0, 1, 1], [], []>} : vector<256x128xbf16>, vector<128x128xbf16>, vector<256x128xf32> -> vector<256x128xf32>
    %21 = vector.broadcast %19 : vector<1x128xf32> to vector<256x128xf32>
    %22 = arith.addf %20, %21 : vector<256x128xf32>
    %cst_15 = arith.constant dense<0xFF800000> : vector<256xf32>
    %23 = vector.multi_reduction <maximumf>, %22, %cst_15 [1] : vector<256x128xf32> to vector<256xf32>
    %24 = vector.shape_cast %23 : vector<256xf32> to vector<256x1xf32>
    %25 = vector.broadcast %24 : vector<256x1xf32> to vector<256x128xf32>
    %26 = arith.subf %22, %25 : vector<256x128xf32>
    %27 = math.exp %26 : vector<256x128xf32>
    %cst_16 = arith.constant dense<0.000000e+00> : vector<256xf32>
    %28 = vector.multi_reduction <add>, %27, %cst_16 [1] : vector<256x128xf32> to vector<256xf32>
    %29 = vector.shape_cast %28 : vector<256xf32> to vector<256x1xf32>
    %30 = tpu.reciprocal %29 {approx = true} : vector<256x1xf32> -> vector<256x1xf32>
    %31 = vector.broadcast %30 : vector<256x1xf32> to vector<256x128xf32>
    %32 = arith.mulf %27, %31 : vector<256x128xf32>
    %c0_17 = arith.constant 0 : index
    %c0_18 = arith.constant 0 : index
    %33 = vector.load %arg6[%c0_17, %c0_18] : memref<256x128xf32, #tpu.memory_space<vmem>>, vector<256x128xf32>
    tpu.vector_store %arg6[%c0_17, %c0_18], %32 {strides = array<i32>} : memref<256x128xf32, #tpu.memory_space<vmem>>, vector<256x128xf32>,
    return
  }
  func.func @transform_0(%arg0: i32) -> (i32, i32) {
    %c0_i32 = arith.constant 0 : i32
    %c0_i32_0 = arith.constant 0 : i32
    return %arg0, %c0_i32 : i32, i32
  }
  func.func @transform_1(%arg0: i32) -> (i32, i32) {
    %c0_i32 = arith.constant 0 : i32
    %c0_i32_0 = arith.constant 0 : i32
    %c0_i32_1 = arith.constant 0 : i32
    return %c0_i32, %c0_i32_0 : i32, i32
  }
  func.func @transform_2(%arg0: i32) -> (i32, i32) {
    %c0_i32 = arith.constant 0 : i32
    %c0_i32_0 = arith.constant 0 : i32
    %c0_i32_1 = arith.constant 0 : i32
    return %c0_i32, %c0_i32_0 : i32, i32
  }
  func.func @transform_3(%arg0: i32) -> (i32, i32) {
    %c0_i32 = arith.constant 0 : i32
    %c0_i32_0 = arith.constant 0 : i32
    %c0_i32_1 = arith.constant 0 : i32
    return %c0_i32, %c0_i32_0 : i32, i32
  }
  func.func @transform_4(%arg0: i32) -> (i32, i32) {
    %c0_i32 = arith.constant 0 : i32
    %c0_i32_0 = arith.constant 0 : i32
    %c0_i32_1 = arith.constant 0 : i32
    return %c0_i32, %c0_i32_0 : i32, i32
  }
  func.func @transform_5(%arg0: i32) -> (i32, i32) {
    %c0_i32 = arith.constant 0 : i32
    %c0_i32_0 = arith.constant 0 : i32
    return %arg0, %c0_i32 : i32, i32
  }
}

module attributes {stable_mosaic.version = 11 : i64} {
  func.func @kernel(%arg0: i32, %arg1: memref<256x16xf32, #tpu.memory_space<vmem>>, %arg2: memref<16x128xbf16, #tpu.memory_space<vmem>>, %arg3: memref<128x128xbf16, #tpu.memory_space<vmem>>, %arg4: memref<128x128xbf16, #tpu.memory_space<vmem>>, %arg5: memref<1x384xf32, #tpu.memory_space<vmem>>, %arg6: memref<256x128xf32, #tpu.memory_space<vmem>>) attributes {dimension_semantics = [#tpu.dimension_semantics<parallel>], iteration_bounds = array<i64: 2>, scalar_prefetch = 0 : i64, scratch_operands = 0 : i64, tpu.core_type = #tpu.core_type<tc>, window_params = [{transform_indices = @transform_0, window_bounds = array<i64: 256, 16>}, {pipeline_mode = #tpu.pipeline_mode<synchronous>, transform_indices = @transform_1, window_bounds = array<i64: 16, 128>}, {pipeline_mode = #tpu.pipeline_mode<synchronous>, transform_indices = @transform_2, window_bounds = array<i64: 128, 128>}, {pipeline_mode = #tpu.pipeline_mode<synchronous>, transform_indices = @transform_3, window_bounds = array<i64: 128, 128>}, {pipeline_mode = #tpu.pipeline_mode<synchronous>, transform_indices = @transform_4, window_bounds = array<i64: 1, 384>}, {transform_indices = @transform_5, window_bounds = array<i64: 256, 128>}]} {
    %c0 = arith.constant 0 : index
    %c0_0 = arith.constant 0 : index
    %0 = vector.load %arg1[%c0, %c0_0] : memref<256x16xf32, #tpu.memory_space<vmem>>, vector<256x16xf32>
    %c0_1 = arith.constant 0 : index
    %c0_2 = arith.constant 0 : index
    %1 = vector.load %arg2[%c0_1, %c0_2] : memref<16x128xbf16, #tpu.memory_space<vmem>>, vector<16x128xbf16>
    %c0_3 = arith.constant 0 : index
    %c0_4 = arith.constant 0 : index
    %2 = vector.load %arg5[%c0_3, %c0_4] : memref<1x384xf32, #tpu.memory_space<vmem>>, vector<1x128xf32>
    %3 = arith.truncf %0 : vector<256x16xf32> to vector<256x16xbf16>
    %cst = arith.constant dense<0.000000e+00> : vector<256x128xf32>
    %4 = tpu.matmul %3, %1, %cst {dimension_numbers = #tpu.dot_dimension_numbers<[1], [0], [0], [1], [0, 0, 1, 1], [], []>} : vector<256x16xbf16>, vector<16x128xbf16>, vector<256x128xf32> -> vector<256x128xf32>
    %5 = vector.broadcast %2 : vector<1x128xf32> to vector<256x128xf32>
    %6 = arith.addf %4, %5 : vector<256x128xf32>
    %cst_5 = arith.constant 0.000000e+00 : f32
    %7 = vector.broadcast %cst_5 : f32 to vector<256x128xf32>
    %8 = arith.maximumf %6, %7 : vector<256x128xf32>
    %9 = arith.truncf %8 : vector<256x128xf32> to vector<256x128xbf16>
    %c0_6 = arith.constant 0 : index
    %c0_7 = arith.constant 0 : index
    %10 = vector.load %arg3[%c0_6, %c0_7] : memref<128x128xbf16, #tpu.memory_space<vmem>>, vector<128x128xbf16>
    %c0_8 = arith.constant 0 : index
    %c128 = arith.constant 128 : index
    %11 = vector.load %arg5[%c0_8, %c128] : memref<1x384xf32, #tpu.memory_space<vmem>>, vector<1x128xf32>
    %cst_9 = arith.constant dense<0.000000e+00> : vector<256x128xf32>
    %12 = tpu.matmul %9, %10, %cst_9 {dimension_numbers = #tpu.dot_dimension_numbers<[1], [0], [0], [1], [0, 0, 1, 1], [], []>} : vector<256x128xbf16>, vector<128x128xbf16>, vector<256x128xf32> -> vector<256x128xf32>
    %13 = vector.broadcast %11 : vector<1x128xf32> to vector<256x128xf32>
    %14 = arith.addf %12, %13 : vector<256x128xf32>
    %cst_10 = arith.constant 0.000000e+00 : f32
    %15 = vector.broadcast %cst_10 : f32 to vector<256x128xf32>
    %16 = arith.maximumf %14, %15 : vector<256x128xf32>
    %17 = arith.truncf %16 : vector<256x128xf32> to vector<256x128xbf16>
    %c0_11 = arith.constant 0 : index
    %c0_12 = arith.constant 0 : index
    %18 = vector.load %arg4[%c0_11, %c0_12] : memref<128x128xbf16, #tpu.memory_space<vmem>>, vector<128x128xbf16>
    %c0_13 = arith.constant 0 : index
    %c256 = arith.constant 256 : index
    %19 = vector.load %arg5[%c0_13, %c256] : memref<1x384xf32, #tpu.memory_space<vmem>>, vector<1x128xf32>
    %cst_14 = arith.constant dense<0.000000e+00> : vector<256x128xf32>
    %20 = tpu.matmul %17, %18, %cst_14 {dimension_numbers = #tpu.dot_dimension_numbers<[1], [0], [0], [1], [0, 0, 1, 1], [], []>} : vector<256x128xbf16>, vector<128x128xbf16>, vector<256x128xf32> -> vector<256x128xf32>
    %21 = vector.broadcast %19 : vector<1x128xf32> to vector<256x128xf32>
    %22 = arith.addf %20, %21 : vector<256x128xf32>
    %cst_15 = arith.constant dense<0xFF800000> : vector<256xf32>
    %23 = vector.multi_reduction <maximumf>, %22, %cst_15 [1] : vector<256x128xf32> to vector<256xf32>
    %24 = vector.shape_cast %23 : vector<256xf32> to vector<256x1xf32>
    %25 = vector.broadcast %24 : vector<256x1xf32> to vector<256x128xf32>
    %26 = arith.subf %22, %25 : vector<256x128xf32>
    %27 = math.exp %26 : vector<256x128xf32>
    %cst_16 = arith.constant dense<0.000000e+00> : vector<256xf32>
    %28 = vector.multi_reduction <add>, %27, %cst_16 [1] : vector<256x128xf32> to vector<256xf32>
    %29 = vector.shape_cast %28 : vector<256xf32> to vector<256x1xf32>
    %30 = tpu.reciprocal %29 {approx = true} : vector<256x1xf32> -> vector<256x1xf32>
    %31 = vector.broadcast %30 : vector<256x1xf32> to vector<256x128xf32>
    %32 = arith.mulf %27, %31 : vector<256x128xf32>
    %c0_17 = arith.constant 0 : index
    %c0_18 = arith.constant 0 : index
    %33 = vector.load %arg6[%c0_17, %c0_18] : memref<256x128xf32, #tpu.memory_space<vmem>>, vector<256x128xf32>
    tpu.vector_store %arg6[%c0_17, %c0_18], %32 {strides = array<i32>} : memref<256x128xf32, #tpu.memory_space<vmem>>, vector<256x128xf32>,
    return
  }
  func.func @transform_0(%arg0: i32) -> (i32, i32) {
    %c0_i32 = arith.constant 0 : i32
    %c0_i32_0 = arith.constant 0 : i32
    return %arg0, %c0_i32 : i32, i32
  }
  func.func @transform_1(%arg0: i32) -> (i32, i32) {
    %c0_i32 = arith.constant 0 : i32
    %c0_i32_0 = arith.constant 0 : i32
    %c0_i32_1 = arith.constant 0 : i32
    return %c0_i32, %c0_i32_0 : i32, i32
  }
  func.func @transform_2(%arg0: i32) -> (i32, i32) {
    %c0_i32 = arith.constant 0 : i32
    %c0_i32_0 = arith.constant 0 : i32
    %c0_i32_1 = arith.constant 0 : i32
    return %c0_i32, %c0_i32_0 : i32, i32
  }
  func.func @transform_3(%arg0: i32) -> (i32, i32) {
    %c0_i32 = arith.constant 0 : i32
    %c0_i32_0 = arith.constant 0 : i32
    %c0_i32_1 = arith.constant 0 : i32
    return %c0_i32, %c0_i32_0 : i32, i32
  }
  func.func @transform_4(%arg0: i32) -> (i32, i32) {
    %c0_i32 = arith.constant 0 : i32
    %c0_i32_0 = arith.constant 0 : i32
    %c0_i32_1 = arith.constant 0 : i32
    return %c0_i32, %c0_i32_0 : i32, i32
  }
  func.func @transform_5(%arg0: i32) -> (i32, i32) {
    %c0_i32 = arith.constant 0 : i32
    %c0_i32_0 = arith.constant 0 : i32
    return %arg0, %c0_i32 : i32, i32
  }
}

</mosaic_0001>

<bundles_post_ra>
// kernel: tpu_custom_call.1
= control target key start
LH: loop header
LB: loop body
LE: loop exit
PB: predicated region body
PF: predicated region fallthrough
CT: control target
= control target key end

     0   :  { %10 = vsyncpa [#allocation3], 0  ;;  %s2648_s0 = inlined_call_operand.vmem [shape: f32[500,16], index: 0, kind: input, shape index: {}]   ;;  %s2649_s1 = inlined_call_operand.vmem [shape: bf16[16,128], index: 1, kind: input, shape index: {}]   ;;  %s2650_s2 = inlined_call_operand.vmem [shape: bf16[128,128], index: 2, kind: input, shape index: {}]   ;;  %s2651_s3 = inlined_call_operand.vmem [shape: bf16[128,128], index: 3, kind: input, shape index: {}]   ;;  %s2652_s4 = inlined_call_operand.vmem [shape: f32[1,384], index: 4, kind: input, shape index: {}]   ;;  %s2653_s5 = inlined_call_operand.hbm [shape: f32[500,128], index: 5, kind: output, shape index: {}]  }
   0x1   :  { %12 = vsyncpa [#allocation3 + $0x1], 0  ;;  %s2018_s18 = smov 0   ;;  %s2020_s19 = smov 0  }
   0x2   :  { %s2022_s20 = smov 0   ;;  %s2024_s21 = smov 0  }
   0x3 LB: > { %s2039_s22 = sadd.s32 4294967295, %s1983_s21   ;;  %s1486_s23 = sadd.s32 4294967294, %s1983_s21   ;;  %s1983_s21 = sphi %s2024_s21, %s2659_s21   ;;  %s1979_s20 = sphi %s2022_s20, %s2658_s20   ;;  %s1975_s19 = sphi %s2020_s19, %s2657_s19   ;;  %s1971_s18 = sphi %s2018_s18, %s2656_s18  }
   0x4   : > { %s2043_s24 = sadd.s32 1, %s1983_s21   ;;  %s135_s25 = sadd.s32 1, %s1979_s20 }
   0x5   : > { %s132_s26 = ssub.s32 %s1983_s21, %s2043_s24  ;;  %p145_p0 = scmp.ne.s32.totalorder %s1979_s20, %s1975_s19 }
   0x6   : > { %p133_p1 = scmp.eq.s32.totalorder %s132_s26, 0  ;;  %p146_p2 = scmp.eq.s32.totalorder %s2039_s22, 1 }
   0x7   : > { %p151_p3 = scmp.ne.s32.totalorder %s1975_s19, %s1971_s18  ;;  %p152_p4 = scmp.eq.s32.totalorder %s1486_s23, 1 }
   0x8   : > { %s2054_s27 = scalar_select %p133_p1, %s1979_s20, %s135_s25  }
   0x9   : > { %p2056_p5 = por %p146_p2, %p145_p0  ;;  %p2060_p6 = por %p152_p4, %p151_p3 }
   0xa   : > { %p1489_p7 = scmp.ge.s32.totalorder %s1983_s21, 1  ;;  %p199_p8 = scmp.lt.s32.totalorder %s1983_s21, 3 }
   0xc   : > { %p200_p9 = pnand %p1489_p7, %p199_p8 }
   0xd   : > { %v1776_v0 = vld [vmem:[%s2649_s1] sm:$0xff] (!%p200_p9)   ;;  %s2070_s7 = sshll.u32 (!%p200_p9), %s2039_s22, 5  ;;  %vm314_vm0 = vcmask (!%p200_p9), 130048   ;;  %v1778_v23 = vld [vmem:[%s2650_s2 + $0x8] sm:$0xff] (!%p200_p9)   ;;  %v1779_v28 = vld [vmem:[%s2650_s2 + $0x10] sm:$0xff] (!%p200_p9)   ;;  %s228_s30 = sand.u32 (!%p200_p9), 1, %s1975_s19  }
   0xe   : > { %203 = sbr.rel (%p200_p9) target bundleno = 1092 (0x444), region = 40  ;;  %p236_p10 = scmp.lt.s32.totalorder (!%p200_p9), %s2070_s7, 62  ;;  %1604 = vmatprep.subr.bf16.mxu0 (!%p200_p9), %v1776_v0  ;;  %1734 = vmatprep.subr.bf16.mxu1 (!%p200_p9), %v1776_v0  ;;  %v1777_v1 = vld [vmem:[%s2650_s2] sm:$0xff] (!%p200_p9)   ;;  %v1780_v37 = vld [vmem:[%s2650_s2 + $0x18] sm:$0xff] (!%p200_p9)   ;;  %v1782_v50 = vld [vmem:[%s2650_s2 + $0x28] sm:$0xff] (!%p200_p9)  }
   0xf   : > { %1605 = vmatpush3.bf16.msra.mxu0 (!%p200_p9), %v1776_v0  ;;  %1735 = vmatpush3.bf16.msra.mxu1 (!%p200_p9), %v1776_v0  ;;  %v1781_v45 = vld [vmem:[%s2650_s2 + $0x20] sm:$0xff] (!%p200_p9)   ;;  %v1783_v55 = vld [vmem:[%s2650_s2 + $0x30] sm:$0xff] (!%p200_p9)   ;;  %v1784_v56 = vld [vmem:[%s2650_s2 + $0x38] sm:$0xff] (!%p200_p9)   ;;  %s1490_s6 = sshll.u32 (!%p200_p9), %s228_s30, 8  ;;  %s2587_s9 = scalar_lea.sflag (!%p200_p9), [#allocation3], %s228_s30 }
  0x10   : > { %1638 = vmatprep.subr.bf16.mxu1 (!%p200_p9), %v1777_v1  ;;  %v1785_v57 = vld [vmem:[%s2651_s3] sm:$0xff] (!%p200_p9)   ;;  %v1786_v58 = vld [vmem:[%s2651_s3 + $0x8] sm:$0xff] (!%p200_p9)   ;;  %v1787_v59 = vld [vmem:[%s2651_s3 + $0x10] sm:$0xff] (!%p200_p9)   ;;  %s2520_s8 = scalar_lea.vmem (!%p200_p9), [#allocation2], %s1490_s6 }
  0x11   : > { %1686 = vmatprep.subr.bf16.mxu0 (!%p200_p9), %v1785_v57  ;;  %v1788_v60 = vld [vmem:[%s2651_s3 + $0x18] sm:$0xff] (!%p200_p9)   ;;  %v1789_v61 = vld [vmem:[%s2651_s3 + $0x20] sm:$0xff] (!%p200_p9)   ;;  %v1790_v62 = vld [vmem:[%s2651_s3 + $0x28] sm:$0xff] (!%p200_p9)  }
  0x12   : > { %v2172_v63 = vld [vmem:[%s2652_s4] ss:$0 sm:$0xff] (!%p200_p9) }
  0x15   : > { %s237_s10 = scalar_select %p236_p10, %s2070_s7, 62 }
  0x17   : > { %s1492_s11 = sshll.u32 %s237_s10, 3  ;;  %s1413_s10 = ssub.s32 (%p2056_p5), 63, %s2070_s7 }
  0x18   : > { %s2080_s14 = scalar_lea.vmem %s2648_s0, %s1492_s11  ;;  %p1414_p11 = scmp.lt.s32.totalorder (%p2056_p5), %s1413_s10, 32 }
  0x19   : > { %v251_v2 = vld [vmem:[%s2080_s14] sm:$0xff]  ;;  %v252_v3 = vld [vmem:[%s2080_s14 + $0x8] sm:$0xff]  ;;  %v253_v4 = vld [vmem:[%s2080_s14 + $0x10] sm:$0xff] }
  0x1a   : > { %v286_v5 = vpack.c.bf16 %v252_v3, %v251_v2  ;;  %v254_v6 = vld [vmem:[%s2080_s14 + $0x18] sm:$0xff]  ;;  %v255_v7 = vld [vmem:[%s2080_s14 + $0x20] sm:$0xff]  ;;  %v256_v8 = vld [vmem:[%s2080_s14 + $0x28] sm:$0xff] }
  0x1b   : > { %v287_v9 = vpack.c.bf16 %v254_v6, %v253_v4  ;;  %v288_v10 = vpack.c.bf16 %v256_v8, %v255_v7  ;;  %v257_v11 = vld [vmem:[%s2080_s14 + $0x30] sm:$0xff]  ;;  %v258_v12 = vld [vmem:[%s2080_s14 + $0x38] sm:$0xff]  ;;  %v259_v13 = vld [vmem:[%s2080_s14 + $0x40] sm:$0xff] }
  0x1c   : > { %1606 = vmatprep.mubr.msk.bf16.mxu0 %vm314_vm0, %v286_v5  ;;  %v260_v14 = vld [vmem:[%s2080_s14 + $0x48] sm:$0xff]  ;;  %v267_v15 = vld [vmem:[%s2080_s14 + $0x80] sm:$0xff]  ;;  %v269_v18 = vld [vmem:[%s2080_s14 + $0x90] sm:$0xff]  ;;  %v289_v24 = vpack.c.bf16 %v258_v12, %v257_v11 }
  0x1d   : > { %1607 = vmatmul.mubr.msk.bf16.vlgmr.msra.gmra.mrb[0].mxu0 %vm314_vm0, %v287_v9  ;;  %v268_v16 = vld [vmem:[%s2080_s14 + $0x88] sm:$0xff]  ;;  %v270_v19 = vld [vmem:[%s2080_s14 + $0x98] sm:$0xff]  ;;  %v271_v20 = vld [vmem:[%s2080_s14 + $0xa0] sm:$0xff]  ;;  %v290_v26 = vpack.c.bf16 %v260_v14, %v259_v13 }
  0x1e   : > { %1610 = vmatprep.mubr.msk.bf16.mxu0 %vm314_vm0, %v288_v10  ;;  %v294_v17 = vpack.c.bf16 %v268_v16, %v267_v15  ;;  %v295_v21 = vpack.c.bf16 %v270_v19, %v269_v18  ;;  %v272_v22 = vld [vmem:[%s2080_s14 + $0xa8] sm:$0xff]  ;;  %v273_v27 = vld [vmem:[%s2080_s14 + $0xb0] sm:$0xff]  ;;  %v274_v29 = vld [vmem:[%s2080_s14 + $0xb8] sm:$0xff]  ;;  %1687 = vmatpush3.bf16.msra.mxu0 %v1785_v57 }
  0x1f   : > { %v296_v25 = vpack.c.bf16 %v272_v22, %v271_v20  ;;  %v275_v30 = vld [vmem:[%s2080_s14 + $0xc0] sm:$0xff]  ;;  %v276_v31 = vld [vmem:[%s2080_s14 + $0xc8] sm:$0xff]  ;;  %v261_v32 = vld [vmem:[%s2080_s14 + $0x50] sm:$0xff]  ;;  %v297_v36 = vpack.c.bf16 %v274_v29, %v273_v27  ;;  %1688 = vmatprep.subr.bf16.mxu0 %v1786_v58 }
  0x20   : > { %1622 = vmatprep.mubr.msk.bf16.mxu1 %vm314_vm0, %v294_v17  ;;  %v262_v33 = vld [vmem:[%s2080_s14 + $0x58] sm:$0xff]  ;;  %v263_v34 = vld [vmem:[%s2080_s14 + $0x60] sm:$0xff]  ;;  %v264_v35 = vld [vmem:[%s2080_s14 + $0x68] sm:$0xff]  ;;  %v298_v38 = vpack.c.bf16 %v276_v31, %v275_v30 }
  0x21   : > { %1623 = vmatmul.mubr.msk.bf16.vlgmr.msra.gmra.mrb[0].mxu1 %vm314_vm0, %v295_v21  ;;  %v291_v39 = vpack.c.bf16 %v262_v33, %v261_v32  ;;  %v292_v40 = vpack.c.bf16 %v264_v35, %v263_v34  ;;  %v277_v41 = vld [vmem:[%s2080_s14 + $0xd0] sm:$0xff]  ;;  %v278_v42 = vld [vmem:[%s2080_s14 + $0xd8] sm:$0xff]  ;;  %v279_v43 = vld [vmem:[%s2080_s14 + $0xe0] sm:$0xff] }
  0x22   : > { %1626 = vmatprep.mubr.msk.bf16.mxu1 %vm314_vm0, %v296_v25  ;;  %1639 = vmatpush3.bf16.msra.mxu1 %v1777_v1  ;;  %v280_v44 = vld [vmem:[%s2080_s14 + $0xe8] sm:$0xff]  ;;  %v265_v46 = vld [vmem:[%s2080_s14 + $0x70] sm:$0xff]  ;;  %v266_v47 = vld [vmem:[%s2080_s14 + $0x78] sm:$0xff]  ;;  %v299_v48 = vpack.c.bf16 %v278_v42, %v277_v41 }
  0x23   : > { %1640 = vmatprep.subr.bf16.mxu1 %v1778_v23  ;;  %v300_v49 = vpack.c.bf16 %v280_v44, %v279_v43  ;;  %v293_v51 = vpack.c.bf16 %v266_v47, %v265_v46  ;;  %v281_v52 = vld [vmem:[%s2080_s14 + $0xf0] sm:$0xff]  ;;  %v282_v53 = vld [vmem:[%s2080_s14 + $0xf8] sm:$0xff]  ;;  %1689 = vmatpush3.bf16.msra.mxu0 %v1786_v58 }
  0x24   : > { %v301_v54 = vpack.c.bf16 %v282_v53, %v281_v52  ;;  %1690 = vmatprep.subr.bf16.mxu0 %v1787_v59 }
  0x25   : > { %1611 = vmatmul.mubr.msk.bf16.gmra.mrb[4].mxu0 %vm314_vm0, %v289_v24 }
  0x26   : > { %1614 = vmatprep.mubr.msk.bf16.mxu0 %vm314_vm0, %v290_v26  ;;  %1641 = vmatpush3.bf16.msra.mxu1 %v1778_v23 }
  0x27   : > { %1642 = vmatprep.subr.bf16.mxu1 %v1779_v28  ;;  %1691 = vmatpush3.bf16.msra.mxu0 %v1787_v59 }
  0x28   : > { %1692 = vmatprep.subr.bf16.mxu0 %v1788_v60 }
  0x29   : > { %1627 = vmatmul.mubr.msk.bf16.gmra.mrb[4].mxu1 %vm314_vm0, %v297_v36 }
  0x2a   : > { %1630 = vmatprep.mubr.msk.bf16.mxu1 %vm314_vm0, %v298_v38  ;;  %1643 = vmatpush3.bf16.msra.mxu1 %v1779_v28 }
  0x2b   : > { %1644 = vmatprep.subr.bf16.mxu1 %v1780_v37  ;;  %1693 = vmatpush3.bf16.msra.mxu0 %v1788_v60 }
  0x2c   : > { %1694 = vmatprep.subr.bf16.mxu0 %v1789_v61 }
  0x2d   : > { %1615 = vmatmul.mubr.msk.bf16.gmra.mrb[8].mxu0 %vm314_vm0, %v291_v39 }
  0x2e   : > { %1618 = vmatprep.mubr.msk.bf16.mxu0 %vm314_vm0, %v292_v40  ;;  %1645 = vmatpush3.bf16.msra.mxu1 %v1780_v37 }
  0x2f   : > { %1646 = vmatprep.subr.bf16.mxu1 %v1781_v45  ;;  %1695 = vmatpush3.bf16.msra.mxu0 %v1789_v61 }
  0x30   : > { %1696 = vmatprep.subr.bf16.mxu0 %v1790_v62 }
  0x31   : > { %1631 = vmatmul.mubr.msk.bf16.gmra.mrb[8].mxu1 %vm314_vm0, %v299_v48 }
  0x32   : > { %1634 = vmatprep.mubr.msk.bf16.mxu1 %vm314_vm0, %v300_v49  ;;  %1647 = vmatpush3.bf16.msra.mxu1 %v1781_v45 }
  0x33   : > { %1648 = vmatprep.subr.bf16.mxu1 %v1782_v50  ;;  %1697 = vmatpush3.bf16.msra.mxu0 %v1790_v62 }
  0x35   : > { %1619 = vmatmul.mubr.msk.bf16.gmra.mrb[12].mxu0 %vm314_vm0, %v293_v51 }
  0x36   : > { %1649 = vmatpush3.bf16.msra.mxu1 %v1782_v50 }
  0x37   : > { %1650 = vmatprep.subr.bf16.mxu1 %v1783_v55 }
  0x39   : > { %1635 = vmatmul.mubr.msk.bf16.gmra.mrb[12].mxu1 %vm314_vm0, %v301_v54 }
  0x3a   : > { %1651 = vmatpush3.bf16.msra.mxu1 %v1783_v55 }
  0x3b   : > { %1652 = vmatprep.subr.bf16.mxu1 %v1784_v56 }
  0x3e   : > { %1653 = vmatpush3.bf16.msra.mxu1 %v1784_v56 }
  0xf0   : > { %v1608_v0 = vpop.f32.mrb[0].mxu0 }
  0xf1   : > { %v406_v1 = vadd.f32 %v1608_v0, %v2172_v63  ;;  %v397_v2 = vpop.f32.mrb[1].mxu0 }
  0xf2   : > { %v398_v3 = vadd.f32 %v2172_v63, %v397_v2  ;;  %v1609_v4 = vpop.f32.mrb[2].mxu0 }
  0xf3   : > { %v409_v5 = vadd.f32 %v1609_v4, %v2172_v63  ;;  %v400_v6 = vpop.f32.mrb[3].mxu0  ;;  %v526_v8 = vmax.f32 %v406_v1, 0.0 }
  0xf4   : > { %v401_v7 = vadd.f32 %v2172_v63, %v400_v6  ;;  %v1624_v10 = vpop.f32.mrb[0].mxu1  ;;  %v524_v11 = vmax.f32 %v398_v3, 0.0 }
  0xf5   : > { %v527_v9 = vmax.f32 %v409_v5, 0.0  ;;  %v470_v13 = vadd.f32 %v1624_v10, %v2172_v63  ;;  %v461_v14 = vpop.f32.mrb[1].mxu1 }
  0xf6   : > { %v525_v12 = vmax.f32 %v401_v7, 0.0  ;;  %v462_v16 = vadd.f32 %v2172_v63, %v461_v14  ;;  %v1625_v17 = vpop.f32.mrb[2].mxu1 }
  0xf7   : > { %v557_v15 = vpack.c.bf16 %v527_v9, %v526_v8  ;;  %v542_v20 = vmax.f32 %v470_v13, 0.0  ;;  %v473_v21 = vadd.f32 %v1625_v17, %v2172_v63  ;;  %v464_v22 = vpop.f32.mrb[3].mxu1 }
  0xf8   : > { %v556_v18 = vpack.c.bf16 %v525_v12, %v524_v11  ;;  %v1612_v19 = vpop.f32.mrb[4].mxu0  ;;  %v540_v25 = vmax.f32 %v462_v16, 0.0  ;;  %v465_v26 = vadd.f32 %v2172_v63, %v464_v22 }
  0xf9   : > { %v422_v23 = vadd.f32 %v1612_v19, %v2172_v63  ;;  %v413_v24 = vpop.f32.mrb[5].mxu0  ;;  %v543_v29 = vmax.f32 %v473_v21, 0.0 }
  0xfa   : > { %v414_v27 = vadd.f32 %v2172_v63, %v413_v24  ;;  %v1613_v28 = vpop.f32.mrb[6].mxu0  ;;  %1654 = vmatprep.mubr.bf16.mxu1 %v556_v18  ;;  %v541_v33 = vmax.f32 %v465_v26, 0.0 }
  0xfb   : > { %v530_v30 = vmax.f32 %v422_v23, 0.0  ;;  %v425_v31 = vadd.f32 %v1613_v28, %v2172_v63  ;;  %v416_v32 = vpop.f32.mrb[7].mxu0  ;;  %1655 = vmatmul.mubr.bf16.vlgmr.msra.gmra.mrb[16].mxu1 %v557_v15  ;;  %v2186_v35 = vpack.c.bf16 %v543_v29, %v542_v20 }
  0xfc   : > { %v417_v34 = vadd.f32 %v2172_v63, %v416_v32  ;;  %v2188_v37 = vpack.c.bf16 %v541_v33, %v540_v25  ;;  %v1628_v38 = vpop.f32.mrb[4].mxu1  ;;  %v528_v39 = vmax.f32 %v414_v27, 0.0 }
  0xfd   : > { %v531_v36 = vmax.f32 %v425_v31, 0.0  ;;  %v486_v41 = vadd.f32 %v1628_v38, %v2172_v63  ;;  %v477_v42 = vpop.f32.mrb[5].mxu1 }
  0xfe   : > { %v529_v40 = vmax.f32 %v417_v34, 0.0  ;;  %v478_v44 = vadd.f32 %v2172_v63, %v477_v42  ;;  %v1629_v45 = vpop.f32.mrb[6].mxu1 }
  0xff   : > { %v559_v43 = vpack.c.bf16 %v531_v36, %v530_v30  ;;  %v546_v48 = vmax.f32 %v486_v41, 0.0  ;;  %v489_v49 = vadd.f32 %v1629_v45, %v2172_v63  ;;  %v480_v50 = vpop.f32.mrb[7].mxu1 }
 0x100   : > { %v558_v46 = vpack.c.bf16 %v529_v40, %v528_v39  ;;  %v1616_v47 = vpop.f32.mrb[8].mxu0  ;;  %v544_v53 = vmax.f32 %v478_v44, 0.0  ;;  %v481_v54 = vadd.f32 %v2172_v63, %v480_v50 }
 0x101   : > { %v438_v51 = vadd.f32 %v1616_v47, %v2172_v63  ;;  %v429_v52 = vpop.f32.mrb[9].mxu0  ;;  %v547_v57 = vmax.f32 %v489_v49, 0.0 }
 0x102   : > { %v430_v55 = vadd.f32 %v2172_v63, %v429_v52  ;;  %v1617_v56 = vpop.f32.mrb[10].mxu0  ;;  %1658 = vmatprep.mubr.bf16.mxu1 %v558_v46  ;;  %v545_v61 = vmax.f32 %v481_v54, 0.0 }
 0x103   : > { %v534_v58 = vmax.f32 %v438_v51, 0.0  ;;  %v441_v59 = vadd.f32 %v1617_v56, %v2172_v63  ;;  %v432_v60 = vpop.f32.mrb[11].mxu0  ;;  %1659 = vmatmul.mubr.bf16.gmra.mrb[20].mxu1 %v559_v43  ;;  %v567_v0 = vpack.c.bf16 %v547_v57, %v546_v48 }
 0x104   : > { %v433_v62 = vadd.f32 %v2172_v63, %v432_v60  ;;  %v566_v2 = vpack.c.bf16 %v545_v61, %v544_v53  ;;  %v1632_v3 = vpop.f32.mrb[8].mxu1  ;;  %v532_v4 = vmax.f32 %v430_v55, 0.0 }
 0x105   : > { %v535_v1 = vmax.f32 %v441_v59, 0.0  ;;  %v502_v6 = vadd.f32 %v1632_v3, %v2172_v63  ;;  %v493_v7 = vpop.f32.mrb[9].mxu1 }
 0x106   : > { %v533_v5 = vmax.f32 %v433_v62, 0.0  ;;  %v494_v9 = vadd.f32 %v2172_v63, %v493_v7  ;;  %v1633_v10 = vpop.f32.mrb[10].mxu1 }
 0x107   : > { %v561_v8 = vpack.c.bf16 %v535_v1, %v534_v58  ;;  %v550_v13 = vmax.f32 %v502_v6, 0.0  ;;  %v505_v14 = vadd.f32 %v1633_v10, %v2172_v63  ;;  %v496_v15 = vpop.f32.mrb[11].mxu1 }
 0x108   : > { %v560_v11 = vpack.c.bf16 %v533_v5, %v532_v4  ;;  %v1620_v12 = vpop.f32.mrb[12].mxu0  ;;  %v548_v18 = vmax.f32 %v494_v9, 0.0  ;;  %v497_v19 = vadd.f32 %v2172_v63, %v496_v15 }
 0x109   : > { %v454_v16 = vadd.f32 %v1620_v12, %v2172_v63  ;;  %v445_v17 = vpop.f32.mrb[13].mxu0  ;;  %v551_v22 = vmax.f32 %v505_v14, 0.0 }
 0x10a   : > { %v446_v20 = vadd.f32 %v2172_v63, %v445_v17  ;;  %v1621_v21 = vpop.f32.mrb[14].mxu0  ;;  %1662 = vmatprep.mubr.bf16.mxu1 %v560_v11  ;;  %v549_v26 = vmax.f32 %v497_v19, 0.0 }
 0x10b   : > { %v538_v23 = vmax.f32 %v454_v16, 0.0  ;;  %v457_v24 = vadd.f32 %v1621_v21, %v2172_v63  ;;  %v448_v25 = vpop.f32.mrb[15].mxu0  ;;  %1663 = vmatmul.mubr.bf16.gmra.mrb[24].mxu1 %v561_v8  ;;  %v569_v28 = vpack.c.bf16 %v551_v22, %v550_v13 }
 0x10c   : > { %v449_v27 = vadd.f32 %v2172_v63, %v448_v25  ;;  %v568_v30 = vpack.c.bf16 %v549_v26, %v548_v18  ;;  %v1636_v31 = vpop.f32.mrb[12].mxu1  ;;  %v536_v32 = vmax.f32 %v446_v20, 0.0 }
 0x10d   : > { %v539_v29 = vmax.f32 %v457_v24, 0.0  ;;  %v518_v34 = vadd.f32 %v1636_v31, %v2172_v63  ;;  %v509_v36 = vpop.f32.mrb[13].mxu1 }
 0x10e   : > { %v537_v33 = vmax.f32 %v449_v27, 0.0  ;;  %v510_v39 = vadd.f32 %v2172_v63, %v509_v36  ;;  %v1637_v40 = vpop.f32.mrb[14].mxu1 }
 0x10f   : > { %v563_v38 = vpack.c.bf16 %v539_v29, %v538_v23  ;;  %v554_v42 = vmax.f32 %v518_v34, 0.0  ;;  %v521_v43 = vadd.f32 %v1637_v40, %v2172_v63  ;;  %v512_v44 = vpop.f32.mrb[15].mxu1 }
 0x110   : > { %v562_v41 = vpack.c.bf16 %v537_v33, %v536_v32  ;;  %v552_v45 = vmax.f32 %v510_v39, 0.0  ;;  %v513_v46 = vadd.f32 %v2172_v63, %v512_v44  ;;  %v1791_v63 = vld [vmem:[%s2651_s3 + $0x30] sm:$0xff]  }
 0x111   : > { %v555_v47 = vmax.f32 %v521_v43, 0.0  ;;  %1698 = vmatprep.subr.bf16.mxu0 %v1791_v63 }
 0x112   : > { %1666 = vmatprep.mubr.bf16.mxu1 %v562_v41  ;;  %v553_v48 = vmax.f32 %v513_v46, 0.0  ;;  %1699 = vmatpush3.bf16.msra.mxu0 %v1791_v63 }
 0x113   : > { %1667 = vmatmul.mubr.bf16.gmra.mrb[28].mxu1 %v563_v38  ;;  %v571_v49 = vpack.c.bf16 %v555_v47, %v554_v42 }
 0x114   : > { %1670 = vmatprep.mubr.bf16.mxu1 %v2188_v37  ;;  %v570_v50 = vpack.c.bf16 %v553_v48, %v552_v45  ;;  %v1792_v37 = vld [vmem:[%s2651_s3 + $0x38] sm:$0xff]  }
 0x115   : > { %1700 = vmatprep.subr.bf16.mxu0 %v1792_v37 }
 0x116   : > { %1701 = vmatpush3.bf16.msra.mxu0 %v1792_v37 }
 0x11b   : > { %1671 = vmatmul.mubr.bf16.gmra.mrb[32].mxu1 %v2186_v35  ;;  %v2221_v35 = vld [vmem:[%s2652_s4 + $0x1] ss:$0 sm:$0xff] }
 0x11c   : > { %1674 = vmatprep.mubr.bf16.mxu1 %v566_v2 }
 0x123   : > { %1675 = vmatmul.mubr.bf16.gmra.mrb[36].mxu1 %v567_v0 }
 0x124   : > { %1678 = vmatprep.mubr.bf16.mxu1 %v568_v30 }
 0x12b   : > { %1679 = vmatmul.mubr.bf16.gmra.mrb[40].mxu1 %v569_v28 }
 0x12c   : > { %1682 = vmatprep.mubr.bf16.mxu1 %v570_v50 }
 0x133   : > { %1683 = vmatmul.mubr.bf16.gmra.mrb[44].mxu1 %v571_v49 }
 0x1ce   : > { %v1656_v51 = vpop.f32.mrb[16].mxu1 }
 0x1cf   : > { %v686_v52 = vadd.f32 %v1656_v51, %v2221_v35  ;;  %v677_v53 = vpop.f32.mrb[17].mxu1 }
 0x1d0   : > { %v678_v54 = vadd.f32 %v2221_v35, %v677_v53  ;;  %v1657_v55 = vpop.f32.mrb[18].mxu1 }
 0x1d1   : > { %v689_v56 = vadd.f32 %v1657_v55, %v2221_v35  ;;  %v680_v57 = vpop.f32.mrb[19].mxu1  ;;  %v806_v59 = vmax.f32 %v686_v52, 0.0 }
 0x1d2   : > { %v681_v58 = vadd.f32 %v2221_v35, %v680_v57  ;;  %v804_v61 = vmax.f32 %v678_v54, 0.0 }
 0x1d3   : > { %v807_v60 = vmax.f32 %v689_v56, 0.0 }
 0x1d4   : > { %v805_v62 = vmax.f32 %v681_v58, 0.0 }
 0x1d5   : > { %v837_v0 = vpack.c.bf16 %v807_v60, %v806_v59 }
 0x1d6   : > { %v836_v1 = vpack.c.bf16 %v805_v62, %v804_v61  ;;  %v1660_v2 = vpop.f32.mrb[20].mxu1 }
 0x1d7   : > { %v702_v3 = vadd.f32 %v1660_v2, %v2221_v35  ;;  %v693_v4 = vpop.f32.mrb[21].mxu1 }
 0x1d8   : > { %v694_v5 = vadd.f32 %v2221_v35, %v693_v4  ;;  %v1661_v6 = vpop.f32.mrb[22].mxu1  ;;  %1702 = vmatprep.mubr.bf16.mxu0 %v836_v1 }
 0x1d9   : > { %v705_v7 = vadd.f32 %v1661_v6, %v2221_v35  ;;  %v696_v8 = vpop.f32.mrb[23].mxu1  ;;  %1703 = vmatmul.mubr.bf16.vlgmr.msra.gmra.mrb[16].mxu0 %v837_v0  ;;  %v810_v10 = vmax.f32 %v702_v3, 0.0 }
 0x1da   : > { %v697_v9 = vadd.f32 %v2221_v35, %v696_v8  ;;  %v808_v12 = vmax.f32 %v694_v5, 0.0 }
 0x1db   : > { %v811_v11 = vmax.f32 %v705_v7, 0.0 }
 0x1dc   : > { %v809_v13 = vmax.f32 %v697_v9, 0.0 }
 0x1dd   : > { %v839_v14 = vpack.c.bf16 %v811_v11, %v810_v10 }
 0x1de   : > { %v838_v15 = vpack.c.bf16 %v809_v13, %v808_v12  ;;  %v1664_v16 = vpop.f32.mrb[24].mxu1 }
 0x1df   : > { %v718_v17 = vadd.f32 %v1664_v16, %v2221_v35  ;;  %v709_v18 = vpop.f32.mrb[25].mxu1 }
 0x1e0   : > { %v710_v19 = vadd.f32 %v2221_v35, %v709_v18  ;;  %v1665_v20 = vpop.f32.mrb[26].mxu1  ;;  %1706 = vmatprep.mubr.bf16.mxu0 %v838_v15 }
 0x1e1   : > { %v721_v21 = vadd.f32 %v1665_v20, %v2221_v35  ;;  %v712_v22 = vpop.f32.mrb[27].mxu1  ;;  %1707 = vmatmul.mubr.bf16.gmra.mrb[20].mxu0 %v839_v14  ;;  %v814_v24 = vmax.f32 %v718_v17, 0.0 }
 0x1e2   : > { %v713_v23 = vadd.f32 %v2221_v35, %v712_v22  ;;  %v812_v26 = vmax.f32 %v710_v19, 0.0 }
 0x1e3   : > { %v815_v25 = vmax.f32 %v721_v21, 0.0 }
 0x1e4   : > { %v813_v27 = vmax.f32 %v713_v23, 0.0 }
 0x1e5   : > { %v841_v28 = vpack.c.bf16 %v815_v25, %v814_v24 }
 0x1e6   : > { %v840_v29 = vpack.c.bf16 %v813_v27, %v812_v26  ;;  %v1668_v30 = vpop.f32.mrb[28].mxu1 }
 0x1e7   : > { %v734_v31 = vadd.f32 %v1668_v30, %v2221_v35  ;;  %v725_v32 = vpop.f32.mrb[29].mxu1 }
 0x1e8   : > { %v726_v33 = vadd.f32 %v2221_v35, %v725_v32  ;;  %v1669_v34 = vpop.f32.mrb[30].mxu1  ;;  %1710 = vmatprep.mubr.bf16.mxu0 %v840_v29 }
 0x1e9   : > { %v737_v36 = vadd.f32 %v1669_v34, %v2221_v35  ;;  %v728_v38 = vpop.f32.mrb[31].mxu1  ;;  %1711 = vmatmul.mubr.bf16.gmra.mrb[24].mxu0 %v841_v28  ;;  %v818_v40 = vmax.f32 %v734_v31, 0.0 }
 0x1ea   : > { %v729_v39 = vadd.f32 %v2221_v35, %v728_v38  ;;  %v816_v42 = vmax.f32 %v726_v33, 0.0 }
 0x1eb   : > { %v819_v41 = vmax.f32 %v737_v36, 0.0 }
 0x1ec   : > { %v817_v43 = vmax.f32 %v729_v39, 0.0  ;;  %v2258_v39 = vld [vmem:[%s2652_s4 + $0x2] ss:$0 sm:$0xff] }
 0x1ed   : > { %v843_v44 = vpack.c.bf16 %v819_v41, %v818_v40 }
 0x1ee   : > { %v842_v45 = vpack.c.bf16 %v817_v43, %v816_v42  ;;  %v1672_v46 = vpop.f32.mrb[32].mxu1 }
 0x1ef   : > { %v750_v47 = vadd.f32 %v1672_v46, %v2221_v35  ;;  %v741_v48 = vpop.f32.mrb[33].mxu1 }
 0x1f0   : > { %v742_v49 = vadd.f32 %v2221_v35, %v741_v48  ;;  %v1673_v50 = vpop.f32.mrb[34].mxu1  ;;  %1714 = vmatprep.mubr.bf16.mxu0 %v842_v45 }
 0x1f1   : > { %v753_v63 = vadd.f32 %v1673_v50, %v2221_v35  ;;  %v744_v37 = vpop.f32.mrb[35].mxu1  ;;  %1715 = vmatmul.mubr.bf16.gmra.mrb[28].mxu0 %v843_v44  ;;  %v822_v52 = vmax.f32 %v750_v47, 0.0 }
 0x1f2   : > { %v745_v51 = vadd.f32 %v2221_v35, %v744_v37  ;;  %v820_v54 = vmax.f32 %v742_v49, 0.0 }
 0x1f3   : > { %v823_v53 = vmax.f32 %v753_v63, 0.0 }
 0x1f4   : > { %v821_v55 = vmax.f32 %v745_v51, 0.0 }
 0x1f5   : > { %v845_v56 = vpack.c.bf16 %v823_v53, %v822_v52 }
 0x1f6   : > { %v844_v57 = vpack.c.bf16 %v821_v55, %v820_v54  ;;  %v1676_v58 = vpop.f32.mrb[36].mxu1 }
 0x1f7   : > { %v766_v59 = vadd.f32 %v1676_v58, %v2221_v35  ;;  %v757_v60 = vpop.f32.mrb[37].mxu1 }
 0x1f8   : > { %v758_v61 = vadd.f32 %v2221_v35, %v757_v60  ;;  %v1677_v62 = vpop.f32.mrb[38].mxu1  ;;  %1718 = vmatprep.mubr.bf16.mxu0 %v844_v57 }
 0x1f9   : > { %v769_v0 = vadd.f32 %v1677_v62, %v2221_v35  ;;  %v760_v1 = vpop.f32.mrb[39].mxu1  ;;  %1719 = vmatmul.mubr.bf16.gmra.mrb[32].mxu0 %v845_v56  ;;  %v826_v3 = vmax.f32 %v766_v59, 0.0 }
 0x1fa   : > { %v761_v2 = vadd.f32 %v2221_v35, %v760_v1  ;;  %v824_v5 = vmax.f32 %v758_v61, 0.0 }
 0x1fb   : > { %v827_v4 = vmax.f32 %v769_v0, 0.0 }
 0x1fc   : > { %v825_v6 = vmax.f32 %v761_v2, 0.0 }
 0x1fd   : > { %v847_v7 = vpack.c.bf16 %v827_v4, %v826_v3 }
 0x1fe   : > { %v846_v8 = vpack.c.bf16 %v825_v6, %v824_v5  ;;  %v1680_v9 = vpop.f32.mrb[40].mxu1 }
 0x1ff   : > { %v782_v10 = vadd.f32 %v1680_v9, %v2221_v35  ;;  %v773_v11 = vpop.f32.mrb[41].mxu1 }
 0x200   : > { %v774_v12 = vadd.f32 %v2221_v35, %v773_v11  ;;  %v1681_v13 = vpop.f32.mrb[42].mxu1  ;;  %1722 = vmatprep.mubr.bf16.mxu0 %v846_v8 }
 0x201   : > { %v785_v14 = vadd.f32 %v1681_v13, %v2221_v35  ;;  %v776_v15 = vpop.f32.mrb[43].mxu1  ;;  %1723 = vmatmul.mubr.bf16.gmra.mrb[36].mxu0 %v847_v7  ;;  %v830_v17 = vmax.f32 %v782_v10, 0.0 }
 0x202   : > { %v777_v16 = vadd.f32 %v2221_v35, %v776_v15  ;;  %v828_v19 = vmax.f32 %v774_v12, 0.0 }
 0x203   : > { %v831_v18 = vmax.f32 %v785_v14, 0.0 }
 0x204   : > { %v829_v20 = vmax.f32 %v777_v16, 0.0 }
 0x205   : > { %v849_v21 = vpack.c.bf16 %v831_v18, %v830_v17 }
 0x206   : > { %v848_v22 = vpack.c.bf16 %v829_v20, %v828_v19  ;;  %v1684_v23 = vpop.f32.mrb[44].mxu1 }
 0x207   : > { %v798_v24 = vadd.f32 %v1684_v23, %v2221_v35  ;;  %v789_v25 = vpop.f32.mrb[45].mxu1 }
 0x208   : > { %v790_v26 = vadd.f32 %v2221_v35, %v789_v25  ;;  %v1685_v27 = vpop.f32.mrb[46].mxu1  ;;  %1726 = vmatprep.mubr.bf16.mxu0 %v848_v22 }
 0x209   : > { %v801_v28 = vadd.f32 %v1685_v27, %v2221_v35  ;;  %v792_v29 = vpop.f32.mrb[47].mxu1  ;;  %1727 = vmatmul.mubr.bf16.gmra.mrb[40].mxu0 %v849_v21  ;;  %v834_v31 = vmax.f32 %v798_v24, 0.0 }
 0x20a   : > { %v793_v30 = vadd.f32 %v2221_v35, %v792_v29  ;;  %v832_v33 = vmax.f32 %v790_v26, 0.0 }
 0x20b   : > { %v835_v32 = vmax.f32 %v801_v28, 0.0 }
 0x20c   : > { %v833_v34 = vmax.f32 %v793_v30, 0.0 }
 0x20d   : > { %v851_v36 = vpack.c.bf16 %v835_v32, %v834_v31 }
 0x20e   : > { %v850_v38 = vpack.c.bf16 %v833_v34, %v832_v33 }
 0x210   : > { %1730 = vmatprep.mubr.bf16.mxu0 %v850_v38 }
 0x211   : > { %1731 = vmatmul.mubr.bf16.gmra.mrb[44].mxu0 %v851_v36 }
 0x2ac   : > { %v1704_v40 = vpop.f32.mrb[16].mxu0 }
 0x2ad   : > { %v2261_v41 = vadd.f32 %v1704_v40, %v2258_v39  ;;  %v957_v42 = vpop.f32.mrb[17].mxu0 }
 0x2ae   : > { %v2264_v35 = vadd.f32 %v2258_v39, %v957_v42  ;;  %v1705_v43 = vpop.f32.mrb[18].mxu0 }
 0x2af   : > { %1088 = vmax.xlane.f32.xlu1 %v2261_v41  ;;  %v960_v44 = vpop.f32.mrb[19].mxu0  ;;  %v2269_v45 = vadd.f32 %v1705_v43, %v2258_v39 }
 0x2b0   : > { %1084 = vmax.xlane.f32.xlu0 %v2264_v35  ;;  %v2272_v46 = vadd.f32 %v2258_v39, %v960_v44 }
 0x2b3   : > { %1090 = vmax.xlane.f32.xlu1 %v2269_v45 }
 0x2b4   : > { %v1708_v47 = vpop.f32.mrb[20].mxu0  ;;  %1086 = vmax.xlane.f32.xlu0 %v2272_v46 }
 0x2b5   : > { %v2277_v48 = vadd.f32 %v1708_v47, %v2258_v39  ;;  %v973_v49 = vpop.f32.mrb[21].mxu0 }
 0x2b6   : > { %v1709_v50 = vpop.f32.mrb[22].mxu0  ;;  %v2285_v51 = vadd.f32 %v2258_v39, %v973_v49 }
 0x2b7   : > { %v2280_v63 = vadd.f32 %v1709_v50, %v2258_v39  ;;  %v976_v37 = vpop.f32.mrb[23].mxu0 }
 0x2b8   : > { %1096 = vmax.xlane.f32.xlu0 %v2277_v48  ;;  %v2288_v52 = vadd.f32 %v2258_v39, %v976_v37 }
 0x2b9   : > { %1098 = vmax.xlane.f32.xlu1 %v2280_v63 }
 0x2bc   : > { %v1712_v53 = vpop.f32.mrb[24].mxu0  ;;  %1092 = vmax.xlane.f32.xlu0 %v2285_v51 }
 0x2bd   : > { %v2292_v54 = vadd.f32 %v1712_v53, %v2258_v39  ;;  %v989_v55 = vpop.f32.mrb[25].mxu0  ;;  %1094 = vmax.xlane.f32.xlu1 %v2288_v52 }
 0x2be   : > { %v1713_v56 = vpop.f32.mrb[26].mxu0  ;;  %v2301_v59 = vadd.f32 %v2258_v39, %v989_v55 }
 0x2bf   : > { %v2296_v57 = vadd.f32 %v1713_v56, %v2258_v39  ;;  %v992_v58 = vpop.f32.mrb[27].mxu0 }
 0x2c0   : > { %1104 = vmax.xlane.f32.xlu0 %v2292_v54  ;;  %v2304_v60 = vadd.f32 %v2258_v39, %v992_v58 }
 0x2c1   : > { %1106 = vmax.xlane.f32.xlu1 %v2296_v57 }
 0x2c4   : > { %v1716_v61 = vpop.f32.mrb[28].mxu0  ;;  %1100 = vmax.xlane.f32.xlu0 %v2301_v59 }
 0x2c5   : > { %v2308_v62 = vadd.f32 %v1716_v61, %v2258_v39  ;;  %v1005_v0 = vpop.f32.mrb[29].mxu0  ;;  %1102 = vmax.xlane.f32.xlu1 %v2304_v60 }
 0x2c6   : > { %v1717_v1 = vpop.f32.mrb[30].mxu0  ;;  %v2317_v4 = vadd.f32 %v2258_v39, %v1005_v0 }
 0x2c7   : > { %v2312_v2 = vadd.f32 %v1717_v1, %v2258_v39  ;;  %v1008_v3 = vpop.f32.mrb[31].mxu0 }
 0x2c8   : > { %1112 = vmax.xlane.f32.xlu0 %v2308_v62  ;;  %v2320_v5 = vadd.f32 %v2258_v39, %v1008_v3 }
 0x2c9   : > { %1114 = vmax.xlane.f32.xlu1 %v2312_v2 }
 0x2cc   : > { %v1720_v6 = vpop.f32.mrb[32].mxu0  ;;  %1108 = vmax.xlane.f32.xlu0 %v2317_v4 }
 0x2cd   : > { %v2324_v7 = vadd.f32 %v1720_v6, %v2258_v39  ;;  %v1021_v8 = vpop.f32.mrb[33].mxu0  ;;  %1110 = vmax.xlane.f32.xlu1 %v2320_v5 }
 0x2ce   : > { %v1721_v9 = vpop.f32.mrb[34].mxu0  ;;  %v2333_v12 = vadd.f32 %v2258_v39, %v1021_v8 }
 0x2cf   : > { %v2328_v10 = vadd.f32 %v1721_v9, %v2258_v39  ;;  %v1024_v11 = vpop.f32.mrb[35].mxu0 }
 0x2d0   : > { %1120 = vmax.xlane.f32.xlu0 %v2324_v7  ;;  %v2336_v13 = vadd.f32 %v2258_v39, %v1024_v11 }
 0x2d1   : > { %1122 = vmax.xlane.f32.xlu1 %v2328_v10 }
 0x2d4   : > { %v1724_v14 = vpop.f32.mrb[36].mxu0  ;;  %1116 = vmax.xlane.f32.xlu0 %v2333_v12 }
 0x2d5   : > { %v2340_v15 = vadd.f32 %v1724_v14, %v2258_v39  ;;  %v1037_v16 = vpop.f32.mrb[37].mxu0  ;;  %1118 = vmax.xlane.f32.xlu1 %v2336_v13 }
 0x2d6   : > { %v1725_v17 = vpop.f32.mrb[38].mxu0  ;;  %v2349_v20 = vadd.f32 %v2258_v39, %v1037_v16 }
 0x2d7   : > { %v2344_v18 = vadd.f32 %v1725_v17, %v2258_v39  ;;  %v1040_v19 = vpop.f32.mrb[39].mxu0 }
 0x2d8   : > { %1128 = vmax.xlane.f32.xlu0 %v2340_v15  ;;  %v2352_v21 = vadd.f32 %v2258_v39, %v1040_v19 }
 0x2d9   : > { %1130 = vmax.xlane.f32.xlu1 %v2344_v18 }
 0x2dc   : > { %v1728_v22 = vpop.f32.mrb[40].mxu0  ;;  %1124 = vmax.xlane.f32.xlu0 %v2349_v20 }
 0x2dd   : > { %v2356_v23 = vadd.f32 %v1728_v22, %v2258_v39  ;;  %v1053_v24 = vpop.f32.mrb[41].mxu0  ;;  %1126 = vmax.xlane.f32.xlu1 %v2352_v21 }
 0x2de   : > { %v1729_v25 = vpop.f32.mrb[42].mxu0  ;;  %v2365_v28 = vadd.f32 %v2258_v39, %v1053_v24 }
 0x2df   : > { %v2360_v26 = vadd.f32 %v1729_v25, %v2258_v39  ;;  %v1056_v27 = vpop.f32.mrb[43].mxu0 }
 0x2e0   : > { %1136 = vmax.xlane.f32.xlu0 %v2356_v23  ;;  %v2368_v29 = vadd.f32 %v2258_v39, %v1056_v27 }
 0x2e1   : > { %1138 = vmax.xlane.f32.xlu1 %v2360_v26 }
 0x2e4   : > { %v1732_v30 = vpop.f32.mrb[44].mxu0  ;;  %1132 = vmax.xlane.f32.xlu0 %v2365_v28 }
 0x2e5   : > { %v1069_v31 = vpop.f32.mrb[45].mxu0  ;;  %1134 = vmax.xlane.f32.xlu1 %v2368_v29  ;;  %v2380_v38 = vadd.f32 %v1732_v30, %v2258_v39 }
 0x2e6   : > { %v2373_v32 = vadd.f32 %v2258_v39, %v1069_v31  ;;  %v1733_v33 = vpop.f32.mrb[46].mxu0 }
 0x2e7   : > { %v1072_v34 = vpop.f32.mrb[47].mxu0  ;;  %v2384_v40 = vadd.f32 %v1733_v33, %v2258_v39 }
 0x2e8   : > { %v2376_v36 = vadd.f32 %v2258_v39, %v1072_v34  ;;  %1140 = vmax.xlane.f32.xlu0 %v2373_v32 }
 0x2ea   : > { %1142 = vmax.xlane.f32.xlu1 %v2376_v36 }
 0x2ec   : > { %1144 = vmax.xlane.f32.xlu0 %v2380_v38 }
 0x2ee   : > { %1146 = vmax.xlane.f32.xlu1 %v2384_v40 }
 0x33c   : > { %v1089_v42 = vpop.xlane.xlu1 %1088 }
 0x33d   : > { %v1150_v43 = vsub.f32 %v2261_v41, %v1089_v42  ;;  %v1085_v44 = vpop.xlane.xlu0 %1084 }
 0x33e   : > { %v1148_v47 = vsub.f32 %v2264_v35, %v1085_v44 }
 0x33f   : > { %v1184_v49 = vmul.f32 1.442695, %v1150_v43 }
 0x340   : > { %v1180_v50 = vmul.f32 1.442695, %v1148_v47  ;;  %v1091_v37 = vpop.xlane.xlu1 %1090 }
 0x341   : > { %1793 = vpow2.f32 %v1184_v49  ;;  %v1151_v53 = vsub.f32 %v2269_v45, %v1091_v37  ;;  %v1087_v55 = vpop.xlane.xlu0 %1086 }
 0x342   : > { %v1149_v39 = vsub.f32 %v2272_v46, %v1087_v55  ;;  %1795 = vpow2.f32 %v1180_v50 }
 0x343   : > { %v1186_v56 = vmul.f32 1.442695, %v1151_v53 }
 0x344   : > { %v1182_v58 = vmul.f32 1.442695, %v1149_v39 }
 0x345   : > { %1797 = vpow2.f32 %v1186_v56  ;;  %v1097_v61 = vpop.xlane.xlu0 %1096 }
 0x346   : > { %v1154_v0 = vsub.f32 %v2277_v48, %v1097_v61  ;;  %v1099_v41 = vpop.xlane.xlu1 %1098  ;;  %1799 = vpow2.f32 %v1182_v58 }
 0x347   : > { %v1155_v1 = vsub.f32 %v2280_v63, %v1099_v41 }
 0x348   : > { %v1192_v35 = vmul.f32 1.442695, %v1154_v0 }
 0x349   : > { %v1194_v3 = vmul.f32 1.442695, %v1155_v1  ;;  %v1093_v6 = vpop.xlane.xlu0 %1092 }
 0x34a   : > { %1801 = vpow2.f32 %v1192_v35  ;;  %v1152_v45 = vsub.f32 %v2285_v51, %v1093_v6  ;;  %v1095_v8 = vpop.xlane.xlu1 %1094 }
 0x34b   : > { %v2395_v9 = vpop.eup %1793  ;;  %v1153_v46 = vsub.f32 %v2288_v52, %v1095_v8  ;;  %1803 = vpow2.f32 %v1194_v3 }
 0x34c   : > { %v1188_v11 = vmul.f32 1.442695, %v1152_v45  ;;  %1248 = vadd.xlane.f32.xlu0 %v2395_v9  ;;  %v2399_v16 = vpop.eup %1795 }
 0x34d   : > { %v1190_v48 = vmul.f32 1.442695, %v1153_v46  ;;  %v1105_v14 = vpop.xlane.xlu0 %1104 }
 0x34e   : > { %1805 = vpow2.f32 %v1188_v11  ;;  %v1158_v63 = vsub.f32 %v2292_v54, %v1105_v14  ;;  %v1107_v17 = vpop.xlane.xlu1 %1106 }
 0x34f   : > { %v2402_v19 = vpop.eup %1797  ;;  %v1159_v51 = vsub.f32 %v2296_v57, %v1107_v17  ;;  %1807 = vpow2.f32 %v1190_v48 }
 0x350   : > { %v1200_v22 = vmul.f32 1.442695, %v1158_v63  ;;  %1250 = vadd.xlane.f32.xlu1 %v2402_v19  ;;  %1244 = vadd.xlane.f32.xlu0 %v2399_v16  ;;  %v2408_v30 = vpop.eup %1799 }
 0x351   : > { %v1202_v52 = vmul.f32 1.442695, %v1159_v51  ;;  %v1101_v24 = vpop.xlane.xlu0 %1100 }
 0x352   : > { %1809 = vpow2.f32 %v1200_v22  ;;  %v1156_v25 = vsub.f32 %v2301_v59, %v1101_v24  ;;  %v1103_v27 = vpop.xlane.xlu1 %1102 }
 0x353   : > { %v1157_v54 = vsub.f32 %v2304_v60, %v1103_v27  ;;  %1811 = vpow2.f32 %v1202_v52 }
 0x354   : > { %v2411_v31 = vpop.eup %1801  ;;  %v1196_v33 = vmul.f32 1.442695, %v1156_v25  ;;  %1246 = vadd.xlane.f32.xlu1 %v2408_v30 }
 0x355   : > { %v1198_v57 = vmul.f32 1.442695, %v1157_v54  ;;  %1256 = vadd.xlane.f32.xlu0 %v2411_v31  ;;  %v1113_v34 = vpop.xlane.xlu0 %1112  ;;  %v2416_v59 = vpop.eup %1803 }
 0x356   : > { %1813 = vpow2.f32 %v1196_v33  ;;  %v1162_v42 = vsub.f32 %v2308_v62, %v1113_v34  ;;  %v1115_v43 = vpop.xlane.xlu1 %1114 }
 0x357   : > { %v1163_v44 = vsub.f32 %v2312_v2, %v1115_v43  ;;  %1815 = vpow2.f32 %v1198_v57 }
 0x358   : > { %v2419_v47 = vpop.eup %1805  ;;  %v1208_v60 = vmul.f32 1.442695, %v1162_v42  ;;  %1258 = vadd.xlane.f32.xlu1 %v2416_v59 }
 0x359   : > { %v1210_v49 = vmul.f32 1.442695, %v1163_v44  ;;  %1252 = vadd.xlane.f32.xlu0 %v2419_v47  ;;  %v1109_v50 = vpop.xlane.xlu0 %1108  ;;  %v2424_v62 = vpop.eup %1807 }
 0x35a   : > { %1817 = vpow2.f32 %v1208_v60  ;;  %v1160_v37 = vsub.f32 %v2317_v4, %v1109_v50  ;;  %v1111_v53 = vpop.xlane.xlu1 %1110 }
 0x35b   : > { %v1161_v55 = vsub.f32 %v2320_v5, %v1111_v53  ;;  %1819 = vpow2.f32 %v1210_v49 }
 0x35c   : > { %v2427_v39 = vpop.eup %1809  ;;  %v1204_v2 = vmul.f32 1.442695, %v1160_v37  ;;  %1254 = vadd.xlane.f32.xlu1 %v2424_v62 }
 0x35d   : > { %v1206_v56 = vmul.f32 1.442695, %v1161_v55  ;;  %1264 = vadd.xlane.f32.xlu0 %v2427_v39  ;;  %v1121_v58 = vpop.xlane.xlu0 %1120  ;;  %v2432_v4 = vpop.eup %1811 }
 0x35e   : > { %1821 = vpow2.f32 %v1204_v2  ;;  %v1166_v61 = vsub.f32 %v2324_v7, %v1121_v58  ;;  %v1123_v0 = vpop.xlane.xlu1 %1122 }
 0x35f   : > { %v1167_v41 = vsub.f32 %v2328_v10, %v1123_v0  ;;  %1823 = vpow2.f32 %v1206_v56 }
 0x360   : > { %v2435_v1 = vpop.eup %1813  ;;  %v1216_v5 = vmul.f32 1.442695, %v1166_v61  ;;  %1266 = vadd.xlane.f32.xlu1 %v2432_v4 }
 0x361   : > { %v1218_v35 = vmul.f32 1.442695, %v1167_v41  ;;  %1260 = vadd.xlane.f32.xlu0 %v2435_v1  ;;  %v1117_v3 = vpop.xlane.xlu0 %1116  ;;  %v2440_v45 = vpop.eup %1815 }
 0x362   : > { %1825 = vpow2.f32 %v1216_v5  ;;  %v1164_v6 = vsub.f32 %v2333_v12, %v1117_v3  ;;  %v1119_v7 = vpop.xlane.xlu1 %1118 }
 0x363   : > { %v1165_v8 = vsub.f32 %v2336_v13, %v1119_v7  ;;  %1827 = vpow2.f32 %v1218_v35 }
 0x364   : > { %v2443_v10 = vpop.eup %1817  ;;  %v1212_v46 = vmul.f32 1.442695, %v1164_v6  ;;  %1262 = vadd.xlane.f32.xlu1 %v2440_v45 }
 0x365   : > { %v1214_v11 = vmul.f32 1.442695, %v1165_v8  ;;  %1272 = vadd.xlane.f32.xlu0 %v2443_v10  ;;  %v1129_v48 = vpop.xlane.xlu0 %1128  ;;  %v2449_v12 = vpop.eup %1819 }
 0x366   : > { %1829 = vpow2.f32 %v1212_v46  ;;  %v1170_v14 = vsub.f32 %v2340_v15, %v1129_v48  ;;  %v1131_v63 = vpop.xlane.xlu1 %1130 }
 0x367   : > { %v1171_v17 = vsub.f32 %v2344_v18, %v1131_v63  ;;  %1831 = vpow2.f32 %v1214_v11 }
 0x368   : > { %v2452_v13 = vpop.eup %1821  ;;  %v1224_v51 = vmul.f32 1.442695, %v1170_v14  ;;  %1274 = vadd.xlane.f32.xlu1 %v2449_v12 }
 0x369   : > { %v1226_v22 = vmul.f32 1.442695, %v1171_v17  ;;  %1268 = vadd.xlane.f32.xlu0 %v2452_v13  ;;  %v1125_v52 = vpop.xlane.xlu0 %1124  ;;  %v2457_v25 = vpop.eup %1823 }
 0x36a   : > { %1833 = vpow2.f32 %v1224_v51  ;;  %v1168_v24 = vsub.f32 %v2349_v20, %v1125_v52  ;;  %v1127_v15 = vpop.xlane.xlu1 %1126 }
 0x36b   : > { %v1169_v27 = vsub.f32 %v2352_v21, %v1127_v15  ;;  %1835 = vpow2.f32 %v1226_v22 }
 0x36c   : > { %v2460_v54 = vpop.eup %1825  ;;  %v1220_v18 = vmul.f32 1.442695, %v1168_v24  ;;  %1270 = vadd.xlane.f32.xlu1 %v2457_v25 }
 0x36d   : > { %v1222_v33 = vmul.f32 1.442695, %v1169_v27  ;;  %1280 = vadd.xlane.f32.xlu0 %v2460_v54  ;;  %v1137_v57 = vpop.xlane.xlu0 %1136  ;;  %v2465_v20 = vpop.eup %1827 }
 0x36e   : > { %1837 = vpow2.f32 %v1220_v18  ;;  %v1174_v34 = vsub.f32 %v2356_v23, %v1137_v57  ;;  %v1139_v42 = vpop.xlane.xlu1 %1138 }
 0x36f   : > { %v1175_v43 = vsub.f32 %v2360_v26, %v1139_v42  ;;  %1839 = vpow2.f32 %v1222_v33 }
 0x370   : > { %v2468_v44 = vpop.eup %1829  ;;  %v1232_v21 = vmul.f32 1.442695, %v1174_v34  ;;  %1282 = vadd.xlane.f32.xlu1 %v2465_v20 }
 0x371   : > { %v1234_v60 = vmul.f32 1.442695, %v1175_v43  ;;  %1276 = vadd.xlane.f32.xlu0 %v2468_v44  ;;  %v1133_v49 = vpop.xlane.xlu0 %1132  ;;  %v2473_v23 = vpop.eup %1831 }
 0x372   : > { %1841 = vpow2.f32 %v1232_v21  ;;  %v1172_v50 = vsub.f32 %v2365_v28, %v1133_v49  ;;  %v1135_v37 = vpop.xlane.xlu1 %1134 }
 0x373   : > { %v1173_v53 = vsub.f32 %v2368_v29, %v1135_v37  ;;  %1843 = vpow2.f32 %v1234_v60 }
 0x374   : > { %v2476_v55 = vpop.eup %1833  ;;  %v1228_v26 = vmul.f32 1.442695, %v1172_v50  ;;  %1278 = vadd.xlane.f32.xlu1 %v2473_v23 }
 0x375   : > { %v1230_v2 = vmul.f32 1.442695, %v1173_v53  ;;  %1288 = vadd.xlane.f32.xlu0 %v2476_v55  ;;  %v1141_v56 = vpop.xlane.xlu0 %1140  ;;  %v2481_v61 = vpop.eup %1835 }
 0x376   : > { %1845 = vpow2.f32 %v1228_v26  ;;  %v1176_v58 = vsub.f32 %v2373_v32, %v1141_v56 }
 0x377   : > { %v1143_v28 = vpop.xlane.xlu1 %1142  ;;  %1847 = vpow2.f32 %v1230_v2 }
 0x378   : > { %v2483_v0 = vpop.eup %1837  ;;  %v1236_v41 = vmul.f32 1.442695, %v1176_v58  ;;  %v1177_v29 = vsub.f32 %v2376_v36, %v1143_v28  ;;  %1290 = vadd.xlane.f32.xlu1 %v2481_v61 }
 0x379   : > { %1284 = vadd.xlane.f32.xlu0 %v2483_v0  ;;  %v1145_v5 = vpop.xlane.xlu0 %1144  ;;  %v2489_v6 = vpop.eup %1839 }
 0x37a   : > { %1849 = vpow2.f32 %v1236_v41  ;;  %v1238_v35 = vmul.f32 1.442695, %v1177_v29  ;;  %v1178_v3 = vsub.f32 %v2380_v38, %v1145_v5 }
 0x37b   : > { %v1147_v32 = vpop.xlane.xlu1 %1146 }
 0x37c   : > { %v2491_v7 = vpop.eup %1841  ;;  %1851 = vpow2.f32 %v1238_v35  ;;  %v1240_v8 = vmul.f32 1.442695, %v1178_v3  ;;  %v1179_v46 = vsub.f32 %v2384_v40, %v1147_v32  ;;  %1286 = vadd.xlane.f32.xlu1 %v2489_v6 }
 0x37d   : > { %1296 = vadd.xlane.f32.xlu0 %v2491_v7  ;;  %v2496_v11 = vpop.eup %1843 }
 0x37e   : > { %1853 = vpow2.f32 %v1240_v8  ;;  %v1242_v36 = vmul.f32 1.442695, %v1179_v46 }
 0x380   : > { %v2498_v48 = vpop.eup %1845  ;;  %1855 = vpow2.f32 %v1242_v36  ;;  %1298 = vadd.xlane.f32.xlu1 %v2496_v11 }
 0x381   : > { %1292 = vadd.xlane.f32.xlu0 %v2498_v48  ;;  %v2502_v38 = vpop.eup %1847 }
 0x384   : > { %v2504_v14 = vpop.eup %1849  ;;  %1294 = vadd.xlane.f32.xlu1 %v2502_v38 }
 0x385   : > { %1300 = vadd.xlane.f32.xlu0 %v2504_v14 }
 0x386   : > { %v2508_v40 = vpop.eup %1851 }
 0x388   : > { %v2510_v63 = vpop.eup %1853  ;;  %1302 = vadd.xlane.f32.xlu1 %v2508_v40 }
 0x389   : > { %1304 = vadd.xlane.f32.xlu0 %v2510_v63 }
 0x38a   : > { %v2514_v17 = vpop.eup %1855 }
 0x38c   : > { %1306 = vadd.xlane.f32.xlu1 %v2514_v17 }
 0x3d9   : > { %v1249_v51 = vpop.xlane.xlu0 %1248 }
 0x3da   : > { %1857 = vrcp.f32 %v1249_v51 }
 0x3dd   : > { %v1251_v22 = vpop.xlane.xlu1 %1250  ;;  %v1245_v52 = vpop.xlane.xlu0 %1244 }
 0x3de   : > { %1859 = vrcp.f32 %v1251_v22 }
 0x3df   : > { %1861 = vrcp.f32 %v1245_v52 }
 0x3e1   : > { %v1247_v24 = vpop.xlane.xlu1 %1246 }
 0x3e2   : > { %1863 = vrcp.f32 %v1247_v24  ;;  %v1257_v15 = vpop.xlane.xlu0 %1256 }
 0x3e3   : > { %1865 = vrcp.f32 %v1257_v15 }
 0x3e4   : > { %v1858_v27 = vpop.eup %1857 }
 0x3e5   : > { %v1342_v18 = vmul.f32 %v1858_v27, %v2395_v9  ;;  %v1259_v33 = vpop.xlane.xlu1 %1258 }
 0x3e6   : > { %1867 = vrcp.f32 %v1259_v33  ;;  %v1253_v57 = vpop.xlane.xlu0 %1252 }
 0x3e7   : > { %1374 = vst [vmem:[%s2520_s8 + $0x10] sm:$0xff] %v1342_v18  ;;  %1869 = vrcp.f32 %v1253_v57 }
 0x3e8   : > { %v1860_v34 = vpop.eup %1859 }
 0x3e9   : > { %v1862_v42 = vpop.eup %1861  ;;  %v1343_v43 = vmul.f32 %v1860_v34, %v2402_v19  ;;  %v1255_v21 = vpop.xlane.xlu1 %1254 }
 0x3ea   : > { %v1340_v60 = vmul.f32 %v1862_v42, %v2399_v16  ;;  %1871 = vrcp.f32 %v1255_v21  ;;  %v1265_v9 = vpop.xlane.xlu0 %1264 }
 0x3eb   : > { %1375 = vst [vmem:[%s2520_s8 + $0x18] sm:$0xff] %v1343_v43  ;;  %1873 = vrcp.f32 %v1265_v9 }
 0x3ec   : > { %v1864_v49 = vpop.eup %1863  ;;  %1372 = vst [vmem:[%s2520_s8] sm:$0xff] %v1340_v60 }
 0x3ed   : > { %v1866_v50 = vpop.eup %1865  ;;  %v1341_v37 = vmul.f32 %v1864_v49, %v2408_v30  ;;  %v1267_v53 = vpop.xlane.xlu1 %1266 }
 0x3ee   : > { %v1346_v26 = vmul.f32 %v1866_v50, %v2411_v31  ;;  %1875 = vrcp.f32 %v1267_v53  ;;  %v1261_v19 = vpop.xlane.xlu0 %1260 }
 0x3ef   : > { %1373 = vst [vmem:[%s2520_s8 + $0x8] sm:$0xff] %v1341_v37  ;;  %1877 = vrcp.f32 %v1261_v19 }
 0x3f0   : > { %v1868_v16 = vpop.eup %1867  ;;  %1378 = vst [vmem:[%s2520_s8 + $0x30] sm:$0xff] %v1346_v26 }
 0x3f1   : > { %v1870_v2 = vpop.eup %1869  ;;  %v1347_v56 = vmul.f32 %v1868_v16, %v2416_v59  ;;  %v1263_v58 = vpop.xlane.xlu1 %1262 }
 0x3f2   : > { %v1344_v28 = vmul.f32 %v1870_v2, %v2419_v47  ;;  %1879 = vrcp.f32 %v1263_v58  ;;  %v1273_v30 = vpop.xlane.xlu0 %1272 }
 0x3f3   : > { %1379 = vst [vmem:[%s2520_s8 + $0x38] sm:$0xff] %v1347_v56  ;;  %1881 = vrcp.f32 %v1273_v30 }
 0x3f4   : > { %v1872_v31 = vpop.eup %1871  ;;  %1376 = vst [vmem:[%s2520_s8 + $0x20] sm:$0xff] %v1344_v28 }
 0x3f5   : > { %v1874_v41 = vpop.eup %1873  ;;  %v1345_v29 = vmul.f32 %v1872_v31, %v2424_v62  ;;  %v1275_v5 = vpop.xlane.xlu1 %1274 }
 0x3f6   : > { %v1350_v35 = vmul.f32 %v1874_v41, %v2427_v39  ;;  %1883 = vrcp.f32 %v1275_v5  ;;  %v1269_v59 = vpop.xlane.xlu0 %1268 }
 0x3f7   : > { %1377 = vst [vmem:[%s2520_s8 + $0x28] sm:$0xff] %v1345_v29  ;;  %1885 = vrcp.f32 %v1269_v59 }
 0x3f8   : > { %v1876_v47 = vpop.eup %1875  ;;  %1382 = vst [vmem:[%s2520_s8 + $0x50] sm:$0xff] %v1350_v35 }
 0x3f9   : > { %v1878_v3 = vpop.eup %1877  ;;  %v1351_v32 = vmul.f32 %v1876_v47, %v2432_v4  ;;  %v1271_v8 = vpop.xlane.xlu1 %1270 }
 0x3fa   : > { %v1348_v46 = vmul.f32 %v1878_v3, %v2435_v1  ;;  %1887 = vrcp.f32 %v1271_v8  ;;  %v1281_v62 = vpop.xlane.xlu0 %1280 }
 0x3fb   : > { %1383 = vst [vmem:[%s2520_s8 + $0x58] sm:$0xff] %v1351_v32  ;;  %1889 = vrcp.f32 %v1281_v62 }
 0x3fc   : > { %v1880_v39 = vpop.eup %1879  ;;  %1380 = vst [vmem:[%s2520_s8 + $0x40] sm:$0xff] %v1348_v46 }
 0x3fd   : > { %v1882_v36 = vpop.eup %1881  ;;  %v1349_v51 = vmul.f32 %v1880_v39, %v2440_v45  ;;  %v1283_v22 = vpop.xlane.xlu1 %1282 }
 0x3fe   : > { %v1354_v52 = vmul.f32 %v1882_v36, %v2443_v10  ;;  %1891 = vrcp.f32 %v1283_v22  ;;  %v1277_v4 = vpop.xlane.xlu0 %1276 }
 0x3ff   : > { %1381 = vst [vmem:[%s2520_s8 + $0x48] sm:$0xff] %v1349_v51  ;;  %1893 = vrcp.f32 %v1277_v4 }
 0x400   : > { %v1884_v1 = vpop.eup %1883  ;;  %1386 = vst [vmem:[%s2520_s8 + $0x70] sm:$0xff] %v1354_v52 }
 0x401   : > { %v1886_v24 = vpop.eup %1885  ;;  %v1355_v15 = vmul.f32 %v1884_v1, %v2449_v12  ;;  %v1279_v27 = vpop.xlane.xlu1 %1278 }
 0x402   : > { %v1352_v18 = vmul.f32 %v1886_v24, %v2452_v13  ;;  %1895 = vrcp.f32 %v1279_v27  ;;  %v1289_v45 = vpop.xlane.xlu0 %1288 }
 0x403   : > { %1387 = vst [vmem:[%s2520_s8 + $0x78] sm:$0xff] %v1355_v15  ;;  %1897 = vrcp.f32 %v1289_v45 }
 0x404   : > { %v1888_v10 = vpop.eup %1887  ;;  %1384 = vst [vmem:[%s2520_s8 + $0x60] sm:$0xff] %v1352_v18 }
 0x405   : > { %v1890_v33 = vpop.eup %1889  ;;  %v1353_v57 = vmul.f32 %v1888_v10, %v2457_v25  ;;  %v1291_v34 = vpop.xlane.xlu1 %1290 }
 0x406   : > { %v1358_v42 = vmul.f32 %v1890_v33, %v2460_v54  ;;  %1899 = vrcp.f32 %v1291_v34  ;;  %v1285_v12 = vpop.xlane.xlu0 %1284 }
 0x407   : > { %1385 = vst [vmem:[%s2520_s8 + $0x68] sm:$0xff] %v1353_v57  ;;  %1901 = vrcp.f32 %v1285_v12 }
 0x408   : > { %v1892_v13 = vpop.eup %1891  ;;  %1390 = vst [vmem:[%s2520_s8 + $0x90] sm:$0xff] %v1358_v42 }
 0x409   : > { %v1894_v43 = vpop.eup %1893  ;;  %v1359_v21 = vmul.f32 %v1892_v13, %v2465_v20  ;;  %v1287_v60 = vpop.xlane.xlu1 %1286 }
 0x40a   : > { %v1356_v9 = vmul.f32 %v1894_v43, %v2468_v44  ;;  %1903 = vrcp.f32 %v1287_v60  ;;  %v1297_v25 = vpop.xlane.xlu0 %1296 }
 0x40b   : > { %1391 = vst [vmem:[%s2520_s8 + $0x98] sm:$0xff] %v1359_v21  ;;  %1905 = vrcp.f32 %v1297_v25 }
 0x40c   : > { %v1896_v54 = vpop.eup %1895  ;;  %1388 = vst [vmem:[%s2520_s8 + $0x80] sm:$0xff] %v1356_v9 }
 0x40d   : > { %v1898_v49 = vpop.eup %1897  ;;  %v1357_v50 = vmul.f32 %v1896_v54, %v2473_v23  ;;  %v1299_v37 = vpop.xlane.xlu1 %1298 }
 0x40e   : > { %v1362_v53 = vmul.f32 %v1898_v49, %v2476_v55  ;;  %1907 = vrcp.f32 %v1299_v37  ;;  %v1293_v20 = vpop.xlane.xlu0 %1292 }
 0x40f   : > { %1389 = vst [vmem:[%s2520_s8 + $0x88] sm:$0xff] %v1357_v50  ;;  %1909 = vrcp.f32 %v1293_v20 }
 0x410   : > { %v1900_v44 = vpop.eup %1899  ;;  %1394 = vst [vmem:[%s2520_s8 + $0xb0] sm:$0xff] %v1362_v53 }
 0x411   : > { %v1902_v26 = vpop.eup %1901  ;;  %v1363_v19 = vmul.f32 %v1900_v44, %v2481_v61  ;;  %v1295_v16 = vpop.xlane.xlu1 %1294 }
 0x412   : > { %v1360_v2 = vmul.f32 %v1902_v26, %v2483_v0  ;;  %1911 = vrcp.f32 %v1295_v16  ;;  %v1301_v23 = vpop.xlane.xlu0 %1300 }
 0x413   : > { %1395 = vst [vmem:[%s2520_s8 + $0xb8] sm:$0xff] %v1363_v19  ;;  %1913 = vrcp.f32 %v1301_v23 }
 0x414   : > { %v1904_v55 = vpop.eup %1903  ;;  %1392 = vst [vmem:[%s2520_s8 + $0xa0] sm:$0xff] %v1360_v2 }
 0x415   : > { %v1906_v56 = vpop.eup %1905  ;;  %v1361_v58 = vmul.f32 %v1904_v55, %v2489_v6  ;;  %v1303_v28 = vpop.xlane.xlu1 %1302 }
 0x416   : > { %v1366_v30 = vmul.f32 %v1906_v56, %v2491_v7  ;;  %1915 = vrcp.f32 %v1303_v28  ;;  %v1305_v61 = vpop.xlane.xlu0 %1304 }
 0x417   : > { %1393 = vst [vmem:[%s2520_s8 + $0xa8] sm:$0xff] %v1361_v58  ;;  %1917 = vrcp.f32 %v1305_v61 }
 0x418   : > { %v1908_v0 = vpop.eup %1907  ;;  %1398 = vst [vmem:[%s2520_s8 + $0xd0] sm:$0xff] %v1366_v30 }
 0x419   : > { %v1910_v31 = vpop.eup %1909  ;;  %v1367_v41 = vmul.f32 %v1908_v0, %v2496_v11  ;;  %v1307_v29 = vpop.xlane.xlu1 %1306 }
 0x41a   : > { %v1364_v5 = vmul.f32 %v1910_v31, %v2498_v48  ;;  %1919 = vrcp.f32 %v1307_v29 }
 0x41b   : > { %1399 = vst [vmem:[%s2520_s8 + $0xd8] sm:$0xff] %v1367_v41 }
 0x41c   : > { %v1912_v6 = vpop.eup %1911  ;;  %1396 = vst [vmem:[%s2520_s8 + $0xc0] sm:$0xff] %v1364_v5 }
 0x41d   : > { %v1914_v7 = vpop.eup %1913  ;;  %v1365_v35 = vmul.f32 %v1912_v6, %v2502_v38 }
 0x41e   : > { %v1368_v59 = vmul.f32 %v1914_v7, %v2504_v14 }
 0x41f   : > { %1397 = vst [vmem:[%s2520_s8 + $0xc8] sm:$0xff] %v1365_v35 }
 0x420   : > { %v1916_v47 = vpop.eup %1915  ;;  %1400 = vst [vmem:[%s2520_s8 + $0xe0] sm:$0xff] %v1368_v59 }
 0x421   : > { %v1918_v11 = vpop.eup %1917  ;;  %v1369_v3 = vmul.f32 %v1916_v47, %v2508_v40  ;;  %1411 = sbr.rel (!%p2056_p5) target bundleno = 1092 (0x444), region = 44 }
 0x422   : > { %v1370_v48 = vmul.f32 %v1918_v11, %v2510_v63 }
 0x423   : > { %1401 = vst [vmem:[%s2520_s8 + $0xe8] sm:$0xff] %v1369_v3 }
 0x424   : > { %v1920_v32 = vpop.eup %1919  ;;  %1402 = vst [vmem:[%s2520_s8 + $0xf0] sm:$0xff] %v1370_v48 }
 0x425   : > { %v1371_v8 = vmul.f32 %v1920_v32, %v2514_v17 }
 0x427   : > { %1403 = vst [vmem:[%s2520_s8 + $0xf8] sm:$0xff] %v1371_v8 }
 0x428   : > { %s2661_s10 = smov (!%p1414_p11, %s1413_s10), 32 }
 0x429   : > { %s2592_s11 = sshll.u32 %s2661_s10, 7 }
 0x42a   : > { %s1418_s12 = ssub.s32 4096, %s2592_s11 }
 0x42b   : > { %1419 = vsyncadd %s2587_s9, %s1418_s12  ;;  %p1532_p12 = scmp.ne.s32.totalorder %s2592_s11, 0  ;;  %s1538_s13 = sshll.u32 %s2039_s22, 12 }
 0x42c   : > { %s2601_s15 = scalar_lea.hbm %s2653_s5, %s1538_s13  ;;  %s1424_s7 = sshll.u32 %s2520_s8, 4  ;;  %s2604_s7 = int_to_ptr.vmem [resolvable:$true] %s1424_s7 }
 0x42d   : > { %s1921_s16 = scalar_lea.vmem %s2604_s7, %s2592_s11  ;;  %s1985_s17 = smov [#allocation2]  }
 0x42e   : > { %p1922_p13 = scmp.ne.s32.totalorder %s2604_s7, %s1921_s16  ;;  %s1925_s23 = sshll.u32 %s1985_s17, 4  ;;  %s1926_s23 = int_to_ptr.vmem [resolvable:$false] %s1925_s23 }
 0x42f   : > { %s1927_s22 = scalar_lea.vmem %s1926_s23, 8192  ;;  %p1928_p2 = scmp.lt.s32.totalorder %s2604_s7, %s1926_s23 }
 0x430   : > { %p1923_p0 = pnand %p1922_p13, %p1532_p12  ;;  %p1929_p3 = scmp.lt.s32.totalorder %s1927_s22, %s1921_s16 }
 0x432   : > { %p1924_p1 = pneg %p1923_p0  ;;  %p1930_p4 = por %p1929_p3, %p1928_p2 }
 0x434   : > { %p1931_p5 = pnand %p1930_p4, %p1924_p1 }
 0x436   : > { %1934 = shalt.err (!%p1931_p5)
}
 0x437   : > { %s1935_s25 = scalar_lea.hbm %s2601_s15, %s2592_s11  ;;  %s1939_s6 = scalar_lea.hbm %s2653_s5, 8064 }
 0x438   : > { %p1936_p7 = scmp.ne.s32.totalorder %s2601_s15, %s1935_s25  ;;  %p1940_p10 = scmp.lt.u32.totalorder %s2601_s15, %s2653_s5 }
 0x439   : > { %p1941_p11 = scmp.lt.u32.totalorder %s1939_s6, %s1935_s25  ;;  %p1943_p0 = scmp.lt.u32.totalorder %s1935_s25, %s2601_s15 }
 0x43a   : > { %p1937_p8 = pnand %p1936_p7, %p1532_p12 }
 0x43b   : > { %p1942_p13 = por %p1941_p11, %p1940_p10 }
 0x43c   : > { %p1938_p9 = pneg %p1937_p8 }
 0x43d   : > { %p1944_p1 = por %p1943_p0, %p1942_p13 }
 0x43f   : > { %p1945_p2 = pnand %p1944_p1, %p1938_p9 }
 0x441   : > { %1948 = shalt.err (!%p1945_p2)
}
 0x442   : > { %s1986_s12 = smov 128   ;;  %s1987_s13 = smov 8  }
 0x443   : > { %1430 = dma.vmem_to_hbm [thread:$0]  (%p1532_p12), %s2604_s7, %s2592_s11, %s2601_s15, %s2587_s9, %s1986_s12, %s1986_s12, %s1987_s13  }
 0x444 PF: > { %p1741_p3 = scmp.ge.s32.totalorder %s1983_s21, 2  ;;  %s1439_s14 = sand.u32 1, %s1971_s18  }
 0x445   : > { %s1440_s28 = scalar_lea.sflag [#allocation3], %s1439_s14 }
 0x446   : > { %p1738_p4 = pnand %p1741_p3, %p2060_p6 }
 0x448   : > { %1966 = dma.done.wait (!%p1738_p4), %s1440_s28, 4096  }
 0x449   : > { %1968 = vsyncadd (!%p1738_p4), %s1440_s28, 4294963200  ;;  %p15_p5 = scmp.ge.s32.totalorder %s2043_s24, 4   ;;  %s2656_s18 = smov %s1975_s19 }
 0x44a   : > { %s2657_s19 = smov %s1979_s20  ;;  %s2658_s20 = smov %s2054_s27 }
 0x44b   : > { %s2659_s21 = smov %s2043_s24  ;;  %17 = sbr.rel (!%p15_p5) target bundleno = 3 (0x3), region = 75 }
 0x452   :  { %1445 = vsyncpa [#allocation3], 1 }
 0x453   :  { %1447 = vsyncpa [#allocation3 + $0x1], 1 }

// kernel: tpu_custom_call.1
= control target key start
LH: loop header
LB: loop body
LE: loop exit
PB: predicated region body
PF: predicated region fallthrough
CT: control target
= control target key end

     0   :  { %10 = vsyncpa [#allocation3], 0  ;;  %s2648_s0 = inlined_call_operand.vmem [shape: f32[500,16], index: 0, kind: input, shape index: {}]   ;;  %s2649_s1 = inlined_call_operand.vmem [shape: bf16[16,128], index: 1, kind: input, shape index: {}]   ;;  %s2650_s2 = inlined_call_operand.vmem [shape: bf16[128,128], index: 2, kind: input, shape index: {}]   ;;  %s2651_s3 = inlined_call_operand.vmem [shape: bf16[128,128], index: 3, kind: input, shape index: {}]   ;;  %s2652_s4 = inlined_call_operand.vmem [shape: f32[1,384], index: 4, kind: input, shape index: {}]   ;;  %s2653_s5 = inlined_call_operand.hbm [shape: f32[500,128], index: 5, kind: output, shape index: {}]  }
   0x1   :  { %12 = vsyncpa [#allocation3 + $0x1], 0  ;;  %s2018_s18 = smov 0   ;;  %s2020_s19 = smov 0  }
   0x2   :  { %s2022_s20 = smov 0   ;;  %s2024_s21 = smov 0  }
   0x3 LB: > { %s2039_s22 = sadd.s32 4294967295, %s1983_s21   ;;  %s1486_s23 = sadd.s32 4294967294, %s1983_s21   ;;  %s1983_s21 = sphi %s2024_s21, %s2659_s21   ;;  %s1979_s20 = sphi %s2022_s20, %s2658_s20   ;;  %s1975_s19 = sphi %s2020_s19, %s2657_s19   ;;  %s1971_s18 = sphi %s2018_s18, %s2656_s18  }
   0x4   : > { %s2043_s24 = sadd.s32 1, %s1983_s21   ;;  %s135_s25 = sadd.s32 1, %s1979_s20 }
   0x5   : > { %s132_s26 = ssub.s32 %s1983_s21, %s2043_s24  ;;  %p145_p0 = scmp.ne.s32.totalorder %s1979_s20, %s1975_s19 }
   0x6   : > { %p133_p1 = scmp.eq.s32.totalorder %s132_s26, 0  ;;  %p146_p2 = scmp.eq.s32.totalorder %s2039_s22, 1 }
   0x7   : > { %p151_p3 = scmp.ne.s32.totalorder %s1975_s19, %s1971_s18  ;;  %p152_p4 = scmp.eq.s32.totalorder %s1486_s23, 1 }
   0x8   : > { %s2054_s27 = scalar_select %p133_p1, %s1979_s20, %s135_s25  }
   0x9   : > { %p2056_p5 = por %p146_p2, %p145_p0  ;;  %p2060_p6 = por %p152_p4, %p151_p3 }
   0xa   : > { %p1489_p7 = scmp.ge.s32.totalorder %s1983_s21, 1  ;;  %p199_p8 = scmp.lt.s32.totalorder %s1983_s21, 3 }
   0xc   : > { %p200_p9 = pnand %p1489_p7, %p199_p8 }
   0xd   : > { %v1776_v0 = vld [vmem:[%s2649_s1] sm:$0xff] (!%p200_p9)   ;;  %s2070_s7 = sshll.u32 (!%p200_p9), %s2039_s22, 5  ;;  %vm314_vm0 = vcmask (!%p200_p9), 130048   ;;  %v1778_v23 = vld [vmem:[%s2650_s2 + $0x8] sm:$0xff] (!%p200_p9)   ;;  %v1779_v28 = vld [vmem:[%s2650_s2 + $0x10] sm:$0xff] (!%p200_p9)   ;;  %s228_s30 = sand.u32 (!%p200_p9), 1, %s1975_s19  }
   0xe   : > { %203 = sbr.rel (%p200_p9) target bundleno = 1092 (0x444), region = 40  ;;  %p236_p10 = scmp.lt.s32.totalorder (!%p200_p9), %s2070_s7, 62  ;;  %1604 = vmatprep.subr.bf16.mxu0 (!%p200_p9), %v1776_v0  ;;  %1734 = vmatprep.subr.bf16.mxu1 (!%p200_p9), %v1776_v0  ;;  %v1777_v1 = vld [vmem:[%s2650_s2] sm:$0xff] (!%p200_p9)   ;;  %v1780_v37 = vld [vmem:[%s2650_s2 + $0x18] sm:$0xff] (!%p200_p9)   ;;  %v1782_v50 = vld [vmem:[%s2650_s2 + $0x28] sm:$0xff] (!%p200_p9)  }
   0xf   : > { %1605 = vmatpush3.bf16.msra.mxu0 (!%p200_p9), %v1776_v0  ;;  %1735 = vmatpush3.bf16.msra.mxu1 (!%p200_p9), %v1776_v0  ;;  %v1781_v45 = vld [vmem:[%s2650_s2 + $0x20] sm:$0xff] (!%p200_p9)   ;;  %v1783_v55 = vld [vmem:[%s2650_s2 + $0x30] sm:$0xff] (!%p200_p9)   ;;  %v1784_v56 = vld [vmem:[%s2650_s2 + $0x38] sm:$0xff] (!%p200_p9)   ;;  %s1490_s6 = sshll.u32 (!%p200_p9), %s228_s30, 8  ;;  %s2587_s9 = scalar_lea.sflag (!%p200_p9), [#allocation3], %s228_s30 }
  0x10   : > { %1638 = vmatprep.subr.bf16.mxu1 (!%p200_p9), %v1777_v1  ;;  %v1785_v57 = vld [vmem:[%s2651_s3] sm:$0xff] (!%p200_p9)   ;;  %v1786_v58 = vld [vmem:[%s2651_s3 + $0x8] sm:$0xff] (!%p200_p9)   ;;  %v1787_v59 = vld [vmem:[%s2651_s3 + $0x10] sm:$0xff] (!%p200_p9)   ;;  %s2520_s8 = scalar_lea.vmem (!%p200_p9), [#allocation2], %s1490_s6 }
  0x11   : > { %1686 = vmatprep.subr.bf16.mxu0 (!%p200_p9), %v1785_v57  ;;  %v1788_v60 = vld [vmem:[%s2651_s3 + $0x18] sm:$0xff] (!%p200_p9)   ;;  %v1789_v61 = vld [vmem:[%s2651_s3 + $0x20] sm:$0xff] (!%p200_p9)   ;;  %v1790_v62 = vld [vmem:[%s2651_s3 + $0x28] sm:$0xff] (!%p200_p9)  }
  0x12   : > { %v2172_v63 = vld [vmem:[%s2652_s4] ss:$0 sm:$0xff] (!%p200_p9) }
  0x15   : > { %s237_s10 = scalar_select %p236_p10, %s2070_s7, 62 }
  0x17   : > { %s1492_s11 = sshll.u32 %s237_s10, 3  ;;  %s1413_s10 = ssub.s32 (%p2056_p5), 63, %s2070_s7 }
  0x18   : > { %s2080_s14 = scalar_lea.vmem %s2648_s0, %s1492_s11  ;;  %p1414_p11 = scmp.lt.s32.totalorder (%p2056_p5), %s1413_s10, 32 }
  0x19   : > { %v251_v2 = vld [vmem:[%s2080_s14] sm:$0xff]  ;;  %v252_v3 = vld [vmem:[%s2080_s14 + $0x8] sm:$0xff]  ;;  %v253_v4 = vld [vmem:[%s2080_s14 + $0x10] sm:$0xff] }
  0x1a   : > { %v286_v5 = vpack.c.bf16 %v252_v3, %v251_v2  ;;  %v254_v6 = vld [vmem:[%s2080_s14 + $0x18] sm:$0xff]  ;;  %v255_v7 = vld [vmem:[%s2080_s14 + $0x20] sm:$0xff]  ;;  %v256_v8 = vld [vmem:[%s2080_s14 + $0x28] sm:$0xff] }
  0x1b   : > { %v287_v9 = vpack.c.bf16 %v254_v6, %v253_v4  ;;  %v288_v10 = vpack.c.bf16 %v256_v8, %v255_v7  ;;  %v257_v11 = vld [vmem:[%s2080_s14 + $0x30] sm:$0xff]  ;;  %v258_v12 = vld [vmem:[%s2080_s14 + $0x38] sm:$0xff]  ;;  %v259_v13 = vld [vmem:[%s2080_s14 + $0x40] sm:$0xff] }
  0x1c   : > { %1606 = vmatprep.mubr.msk.bf16.mxu0 %vm314_vm0, %v286_v5  ;;  %v260_v14 = vld [vmem:[%s2080_s14 + $0x48] sm:$0xff]  ;;  %v267_v15 = vld [vmem:[%s2080_s14 + $0x80] sm:$0xff]  ;;  %v269_v18 = vld [vmem:[%s2080_s14 + $0x90] sm:$0xff]  ;;  %v289_v24 = vpack.c.bf16 %v258_v12, %v257_v11 }
  0x1d   : > { %1607 = vmatmul.mubr.msk.bf16.vlgmr.msra.gmra.mrb[0].mxu0 %vm314_vm0, %v287_v9  ;;  %v268_v16 = vld [vmem:[%s2080_s14 + $0x88] sm:$0xff]  ;;  %v270_v19 = vld [vmem:[%s2080_s14 + $0x98] sm:$0xff]  ;;  %v271_v20 = vld [vmem:[%s2080_s14 + $0xa0] sm:$0xff]  ;;  %v290_v26 = vpack.c.bf16 %v260_v14, %v259_v13 }
  0x1e   : > { %1610 = vmatprep.mubr.msk.bf16.mxu0 %vm314_vm0, %v288_v10  ;;  %v294_v17 = vpack.c.bf16 %v268_v16, %v267_v15  ;;  %v295_v21 = vpack.c.bf16 %v270_v19, %v269_v18  ;;  %v272_v22 = vld [vmem:[%s2080_s14 + $0xa8] sm:$0xff]  ;;  %v273_v27 = vld [vmem:[%s2080_s14 + $0xb0] sm:$0xff]  ;;  %v274_v29 = vld [vmem:[%s2080_s14 + $0xb8] sm:$0xff]  ;;  %1687 = vmatpush3.bf16.msra.mxu0 %v1785_v57 }
  0x1f   : > { %v296_v25 = vpack.c.bf16 %v272_v22, %v271_v20  ;;  %v275_v30 = vld [vmem:[%s2080_s14 + $0xc0] sm:$0xff]  ;;  %v276_v31 = vld [vmem:[%s2080_s14 + $0xc8] sm:$0xff]  ;;  %v261_v32 = vld [vmem:[%s2080_s14 + $0x50] sm:$0xff]  ;;  %v297_v36 = vpack.c.bf16 %v274_v29, %v273_v27  ;;  %1688 = vmatprep.subr.bf16.mxu0 %v1786_v58 }
  0x20   : > { %1622 = vmatprep.mubr.msk.bf16.mxu1 %vm314_vm0, %v294_v17  ;;  %v262_v33 = vld [vmem:[%s2080_s14 + $0x58] sm:$0xff]  ;;  %v263_v34 = vld [vmem:[%s2080_s14 + $0x60] sm:$0xff]  ;;  %v264_v35 = vld [vmem:[%s2080_s14 + $0x68] sm:$0xff]  ;;  %v298_v38 = vpack.c.bf16 %v276_v31, %v275_v30 }
  0x21   : > { %1623 = vmatmul.mubr.msk.bf16.vlgmr.msra.gmra.mrb[0].mxu1 %vm314_vm0, %v295_v21  ;;  %v291_v39 = vpack.c.bf16 %v262_v33, %v261_v32  ;;  %v292_v40 = vpack.c.bf16 %v264_v35, %v263_v34  ;;  %v277_v41 = vld [vmem:[%s2080_s14 + $0xd0] sm:$0xff]  ;;  %v278_v42 = vld [vmem:[%s2080_s14 + $0xd8] sm:$0xff]  ;;  %v279_v43 = vld [vmem:[%s2080_s14 + $0xe0] sm:$0xff] }
  0x22   : > { %1626 = vmatprep.mubr.msk.bf16.mxu1 %vm314_vm0, %v296_v25  ;;  %1639 = vmatpush3.bf16.msra.mxu1 %v1777_v1  ;;  %v280_v44 = vld [vmem:[%s2080_s14 + $0xe8] sm:$0xff]  ;;  %v265_v46 = vld [vmem:[%s2080_s14 + $0x70] sm:$0xff]  ;;  %v266_v47 = vld [vmem:[%s2080_s14 + $0x78] sm:$0xff]  ;;  %v299_v48 = vpack.c.bf16 %v278_v42, %v277_v41 }
  0x23   : > { %1640 = vmatprep.subr.bf16.mxu1 %v1778_v23  ;;  %v300_v49 = vpack.c.bf16 %v280_v44, %v279_v43  ;;  %v293_v51 = vpack.c.bf16 %v266_v47, %v265_v46  ;;  %v281_v52 = vld [vmem:[%s2080_s14 + $0xf0] sm:$0xff]  ;;  %v282_v53 = vld [vmem:[%s2080_s14 + $0xf8] sm:$0xff]  ;;  %1689 = vmatpush3.bf16.msra.mxu0 %v1786_v58 }
  0x24   : > { %v301_v54 = vpack.c.bf16 %v282_v53, %v281_v52  ;;  %1690 = vmatprep.subr.bf16.mxu0 %v1787_v59 }
  0x25   : > { %1611 = vmatmul.mubr.msk.bf16.gmra.mrb[4].mxu0 %vm314_vm0, %v289_v24 }
  0x26   : > { %1614 = vmatprep.mubr.msk.bf16.mxu0 %vm314_vm0, %v290_v26  ;;  %1641 = vmatpush3.bf16.msra.mxu1 %v1778_v23 }
  0x27   : > { %1642 = vmatprep.subr.bf16.mxu1 %v1779_v28  ;;  %1691 = vmatpush3.bf16.msra.mxu0 %v1787_v59 }
  0x28   : > { %1692 = vmatprep.subr.bf16.mxu0 %v1788_v60 }
  0x29   : > { %1627 = vmatmul.mubr.msk.bf16.gmra.mrb[4].mxu1 %vm314_vm0, %v297_v36 }
  0x2a   : > { %1630 = vmatprep.mubr.msk.bf16.mxu1 %vm314_vm0, %v298_v38  ;;  %1643 = vmatpush3.bf16.msra.mxu1 %v1779_v28 }
  0x2b   : > { %1644 = vmatprep.subr.bf16.mxu1 %v1780_v37  ;;  %1693 = vmatpush3.bf16.msra.mxu0 %v1788_v60 }
  0x2c   : > { %1694 = vmatprep.subr.bf16.mxu0 %v1789_v61 }
  0x2d   : > { %1615 = vmatmul.mubr.msk.bf16.gmra.mrb[8].mxu0 %vm314_vm0, %v291_v39 }
  0x2e   : > { %1618 = vmatprep.mubr.msk.bf16.mxu0 %vm314_vm0, %v292_v40  ;;  %1645 = vmatpush3.bf16.msra.mxu1 %v1780_v37 }
  0x2f   : > { %1646 = vmatprep.subr.bf16.mxu1 %v1781_v45  ;;  %1695 = vmatpush3.bf16.msra.mxu0 %v1789_v61 }
  0x30   : > { %1696 = vmatprep.subr.bf16.mxu0 %v1790_v62 }
  0x31   : > { %1631 = vmatmul.mubr.msk.bf16.gmra.mrb[8].mxu1 %vm314_vm0, %v299_v48 }
  0x32   : > { %1634 = vmatprep.mubr.msk.bf16.mxu1 %vm314_vm0, %v300_v49  ;;  %1647 = vmatpush3.bf16.msra.mxu1 %v1781_v45 }
  0x33   : > { %1648 = vmatprep.subr.bf16.mxu1 %v1782_v50  ;;  %1697 = vmatpush3.bf16.msra.mxu0 %v1790_v62 }
  0x35   : > { %1619 = vmatmul.mubr.msk.bf16.gmra.mrb[12].mxu0 %vm314_vm0, %v293_v51 }
  0x36   : > { %1649 = vmatpush3.bf16.msra.mxu1 %v1782_v50 }
  0x37   : > { %1650 = vmatprep.subr.bf16.mxu1 %v1783_v55 }
  0x39   : > { %1635 = vmatmul.mubr.msk.bf16.gmra.mrb[12].mxu1 %vm314_vm0, %v301_v54 }
  0x3a   : > { %1651 = vmatpush3.bf16.msra.mxu1 %v1783_v55 }
  0x3b   : > { %1652 = vmatprep.subr.bf16.mxu1 %v1784_v56 }
  0x3e   : > { %1653 = vmatpush3.bf16.msra.mxu1 %v1784_v56 }
  0xf0   : > { %v1608_v0 = vpop.f32.mrb[0].mxu0 }
  0xf1   : > { %v406_v1 = vadd.f32 %v1608_v0, %v2172_v63  ;;  %v397_v2 = vpop.f32.mrb[1].mxu0 }
  0xf2   : > { %v398_v3 = vadd.f32 %v2172_v63, %v397_v2  ;;  %v1609_v4 = vpop.f32.mrb[2].mxu0 }
  0xf3   : > { %v409_v5 = vadd.f32 %v1609_v4, %v2172_v63  ;;  %v400_v6 = vpop.f32.mrb[3].mxu0  ;;  %v526_v8 = vmax.f32 %v406_v1, 0.0 }
  0xf4   : > { %v401_v7 = vadd.f32 %v2172_v63, %v400_v6  ;;  %v1624_v10 = vpop.f32.mrb[0].mxu1  ;;  %v524_v11 = vmax.f32 %v398_v3, 0.0 }
  0xf5   : > { %v527_v9 = vmax.f32 %v409_v5, 0.0  ;;  %v470_v13 = vadd.f32 %v1624_v10, %v2172_v63  ;;  %v461_v14 = vpop.f32.mrb[1].mxu1 }
  0xf6   : > { %v525_v12 = vmax.f32 %v401_v7, 0.0  ;;  %v462_v16 = vadd.f32 %v2172_v63, %v461_v14  ;;  %v1625_v17 = vpop.f32.mrb[2].mxu1 }
  0xf7   : > { %v557_v15 = vpack.c.bf16 %v527_v9, %v526_v8  ;;  %v542_v20 = vmax.f32 %v470_v13, 0.0  ;;  %v473_v21 = vadd.f32 %v1625_v17, %v2172_v63  ;;  %v464_v22 = vpop.f32.mrb[3].mxu1 }
  0xf8   : > { %v556_v18 = vpack.c.bf16 %v525_v12, %v524_v11  ;;  %v1612_v19 = vpop.f32.mrb[4].mxu0  ;;  %v540_v25 = vmax.f32 %v462_v16, 0.0  ;;  %v465_v26 = vadd.f32 %v2172_v63, %v464_v22 }
  0xf9   : > { %v422_v23 = vadd.f32 %v1612_v19, %v2172_v63  ;;  %v413_v24 = vpop.f32.mrb[5].mxu0  ;;  %v543_v29 = vmax.f32 %v473_v21, 0.0 }
  0xfa   : > { %v414_v27 = vadd.f32 %v2172_v63, %v413_v24  ;;  %v1613_v28 = vpop.f32.mrb[6].mxu0  ;;  %1654 = vmatprep.mubr.bf16.mxu1 %v556_v18  ;;  %v541_v33 = vmax.f32 %v465_v26, 0.0 }
  0xfb   : > { %v530_v30 = vmax.f32 %v422_v23, 0.0  ;;  %v425_v31 = vadd.f32 %v1613_v28, %v2172_v63  ;;  %v416_v32 = vpop.f32.mrb[7].mxu0  ;;  %1655 = vmatmul.mubr.bf16.vlgmr.msra.gmra.mrb[16].mxu1 %v557_v15  ;;  %v2186_v35 = vpack.c.bf16 %v543_v29, %v542_v20 }
  0xfc   : > { %v417_v34 = vadd.f32 %v2172_v63, %v416_v32  ;;  %v2188_v37 = vpack.c.bf16 %v541_v33, %v540_v25  ;;  %v1628_v38 = vpop.f32.mrb[4].mxu1  ;;  %v528_v39 = vmax.f32 %v414_v27, 0.0 }
  0xfd   : > { %v531_v36 = vmax.f32 %v425_v31, 0.0  ;;  %v486_v41 = vadd.f32 %v1628_v38, %v2172_v63  ;;  %v477_v42 = vpop.f32.mrb[5].mxu1 }
  0xfe   : > { %v529_v40 = vmax.f32 %v417_v34, 0.0  ;;  %v478_v44 = vadd.f32 %v2172_v63, %v477_v42  ;;  %v1629_v45 = vpop.f32.mrb[6].mxu1 }
  0xff   : > { %v559_v43 = vpack.c.bf16 %v531_v36, %v530_v30  ;;  %v546_v48 = vmax.f32 %v486_v41, 0.0  ;;  %v489_v49 = vadd.f32 %v1629_v45, %v2172_v63  ;;  %v480_v50 = vpop.f32.mrb[7].mxu1 }
 0x100   : > { %v558_v46 = vpack.c.bf16 %v529_v40, %v528_v39  ;;  %v1616_v47 = vpop.f32.mrb[8].mxu0  ;;  %v544_v53 = vmax.f32 %v478_v44, 0.0  ;;  %v481_v54 = vadd.f32 %v2172_v63, %v480_v50 }
 0x101   : > { %v438_v51 = vadd.f32 %v1616_v47, %v2172_v63  ;;  %v429_v52 = vpop.f32.mrb[9].mxu0  ;;  %v547_v57 = vmax.f32 %v489_v49, 0.0 }
 0x102   : > { %v430_v55 = vadd.f32 %v2172_v63, %v429_v52  ;;  %v1617_v56 = vpop.f32.mrb[10].mxu0  ;;  %1658 = vmatprep.mubr.bf16.mxu1 %v558_v46  ;;  %v545_v61 = vmax.f32 %v481_v54, 0.0 }
 0x103   : > { %v534_v58 = vmax.f32 %v438_v51, 0.0  ;;  %v441_v59 = vadd.f32 %v1617_v56, %v2172_v63  ;;  %v432_v60 = vpop.f32.mrb[11].mxu0  ;;  %1659 = vmatmul.mubr.bf16.gmra.mrb[20].mxu1 %v559_v43  ;;  %v567_v0 = vpack.c.bf16 %v547_v57, %v546_v48 }
 0x104   : > { %v433_v62 = vadd.f32 %v2172_v63, %v432_v60  ;;  %v566_v2 = vpack.c.bf16 %v545_v61, %v544_v53  ;;  %v1632_v3 = vpop.f32.mrb[8].mxu1  ;;  %v532_v4 = vmax.f32 %v430_v55, 0.0 }
 0x105   : > { %v535_v1 = vmax.f32 %v441_v59, 0.0  ;;  %v502_v6 = vadd.f32 %v1632_v3, %v2172_v63  ;;  %v493_v7 = vpop.f32.mrb[9].mxu1 }
 0x106   : > { %v533_v5 = vmax.f32 %v433_v62, 0.0  ;;  %v494_v9 = vadd.f32 %v2172_v63, %v493_v7  ;;  %v1633_v10 = vpop.f32.mrb[10].mxu1 }
 0x107   : > { %v561_v8 = vpack.c.bf16 %v535_v1, %v534_v58  ;;  %v550_v13 = vmax.f32 %v502_v6, 0.0  ;;  %v505_v14 = vadd.f32 %v1633_v10, %v2172_v63  ;;  %v496_v15 = vpop.f32.mrb[11].mxu1 }
 0x108   : > { %v560_v11 = vpack.c.bf16 %v533_v5, %v532_v4  ;;  %v1620_v12 = vpop.f32.mrb[12].mxu0  ;;  %v548_v18 = vmax.f32 %v494_v9, 0.0  ;;  %v497_v19 = vadd.f32 %v2172_v63, %v496_v15 }
 0x109   : > { %v454_v16 = vadd.f32 %v1620_v12, %v2172_v63  ;;  %v445_v17 = vpop.f32.mrb[13].mxu0  ;;  %v551_v22 = vmax.f32 %v505_v14, 0.0 }
 0x10a   : > { %v446_v20 = vadd.f32 %v2172_v63, %v445_v17  ;;  %v1621_v21 = vpop.f32.mrb[14].mxu0  ;;  %1662 = vmatprep.mubr.bf16.mxu1 %v560_v11  ;;  %v549_v26 = vmax.f32 %v497_v19, 0.0 }
 0x10b   : > { %v538_v23 = vmax.f32 %v454_v16, 0.0  ;;  %v457_v24 = vadd.f32 %v1621_v21, %v2172_v63  ;;  %v448_v25 = vpop.f32.mrb[15].mxu0  ;;  %1663 = vmatmul.mubr.bf16.gmra.mrb[24].mxu1 %v561_v8  ;;  %v569_v28 = vpack.c.bf16 %v551_v22, %v550_v13 }
 0x10c   : > { %v449_v27 = vadd.f32 %v2172_v63, %v448_v25  ;;  %v568_v30 = vpack.c.bf16 %v549_v26, %v548_v18  ;;  %v1636_v31 = vpop.f32.mrb[12].mxu1  ;;  %v536_v32 = vmax.f32 %v446_v20, 0.0 }
 0x10d   : > { %v539_v29 = vmax.f32 %v457_v24, 0.0  ;;  %v518_v34 = vadd.f32 %v1636_v31, %v2172_v63  ;;  %v509_v36 = vpop.f32.mrb[13].mxu1 }
 0x10e   : > { %v537_v33 = vmax.f32 %v449_v27, 0.0  ;;  %v510_v39 = vadd.f32 %v2172_v63, %v509_v36  ;;  %v1637_v40 = vpop.f32.mrb[14].mxu1 }
 0x10f   : > { %v563_v38 = vpack.c.bf16 %v539_v29, %v538_v23  ;;  %v554_v42 = vmax.f32 %v518_v34, 0.0  ;;  %v521_v43 = vadd.f32 %v1637_v40, %v2172_v63  ;;  %v512_v44 = vpop.f32.mrb[15].mxu1 }
 0x110   : > { %v562_v41 = vpack.c.bf16 %v537_v33, %v536_v32  ;;  %v552_v45 = vmax.f32 %v510_v39, 0.0  ;;  %v513_v46 = vadd.f32 %v2172_v63, %v512_v44  ;;  %v1791_v63 = vld [vmem:[%s2651_s3 + $0x30] sm:$0xff]  }
 0x111   : > { %v555_v47 = vmax.f32 %v521_v43, 0.0  ;;  %1698 = vmatprep.subr.bf16.mxu0 %v1791_v63 }
 0x112   : > { %1666 = vmatprep.mubr.bf16.mxu1 %v562_v41  ;;  %v553_v48 = vmax.f32 %v513_v46, 0.0  ;;  %1699 = vmatpush3.bf16.msra.mxu0 %v1791_v63 }
 0x113   : > { %1667 = vmatmul.mubr.bf16.gmra.mrb[28].mxu1 %v563_v38  ;;  %v571_v49 = vpack.c.bf16 %v555_v47, %v554_v42 }
 0x114   : > { %1670 = vmatprep.mubr.bf16.mxu1 %v2188_v37  ;;  %v570_v50 = vpack.c.bf16 %v553_v48, %v552_v45  ;;  %v1792_v37 = vld [vmem:[%s2651_s3 + $0x38] sm:$0xff]  }
 0x115   : > { %1700 = vmatprep.subr.bf16.mxu0 %v1792_v37 }
 0x116   : > { %1701 = vmatpush3.bf16.msra.mxu0 %v1792_v37 }
 0x11b   : > { %1671 = vmatmul.mubr.bf16.gmra.mrb[32].mxu1 %v2186_v35  ;;  %v2221_v35 = vld [vmem:[%s2652_s4 + $0x1] ss:$0 sm:$0xff] }
 0x11c   : > { %1674 = vmatprep.mubr.bf16.mxu1 %v566_v2 }
 0x123   : > { %1675 = vmatmul.mubr.bf16.gmra.mrb[36].mxu1 %v567_v0 }
 0x124   : > { %1678 = vmatprep.mubr.bf16.mxu1 %v568_v30 }
 0x12b   : > { %1679 = vmatmul.mubr.bf16.gmra.mrb[40].mxu1 %v569_v28 }
 0x12c   : > { %1682 = vmatprep.mubr.bf16.mxu1 %v570_v50 }
 0x133   : > { %1683 = vmatmul.mubr.bf16.gmra.mrb[44].mxu1 %v571_v49 }
 0x1ce   : > { %v1656_v51 = vpop.f32.mrb[16].mxu1 }
 0x1cf   : > { %v686_v52 = vadd.f32 %v1656_v51, %v2221_v35  ;;  %v677_v53 = vpop.f32.mrb[17].mxu1 }
 0x1d0   : > { %v678_v54 = vadd.f32 %v2221_v35, %v677_v53  ;;  %v1657_v55 = vpop.f32.mrb[18].mxu1 }
 0x1d1   : > { %v689_v56 = vadd.f32 %v1657_v55, %v2221_v35  ;;  %v680_v57 = vpop.f32.mrb[19].mxu1  ;;  %v806_v59 = vmax.f32 %v686_v52, 0.0 }
 0x1d2   : > { %v681_v58 = vadd.f32 %v2221_v35, %v680_v57  ;;  %v804_v61 = vmax.f32 %v678_v54, 0.0 }
 0x1d3   : > { %v807_v60 = vmax.f32 %v689_v56, 0.0 }
 0x1d4   : > { %v805_v62 = vmax.f32 %v681_v58, 0.0 }
 0x1d5   : > { %v837_v0 = vpack.c.bf16 %v807_v60, %v806_v59 }
 0x1d6   : > { %v836_v1 = vpack.c.bf16 %v805_v62, %v804_v61  ;;  %v1660_v2 = vpop.f32.mrb[20].mxu1 }
 0x1d7   : > { %v702_v3 = vadd.f32 %v1660_v2, %v2221_v35  ;;  %v693_v4 = vpop.f32.mrb[21].mxu1 }
 0x1d8   : > { %v694_v5 = vadd.f32 %v2221_v35, %v693_v4  ;;  %v1661_v6 = vpop.f32.mrb[22].mxu1  ;;  %1702 = vmatprep.mubr.bf16.mxu0 %v836_v1 }
 0x1d9   : > { %v705_v7 = vadd.f32 %v1661_v6, %v2221_v35  ;;  %v696_v8 = vpop.f32.mrb[23].mxu1  ;;  %1703 = vmatmul.mubr.bf16.vlgmr.msra.gmra.mrb[16].mxu0 %v837_v0  ;;  %v810_v10 = vmax.f32 %v702_v3, 0.0 }
 0x1da   : > { %v697_v9 = vadd.f32 %v2221_v35, %v696_v8  ;;  %v808_v12 = vmax.f32 %v694_v5, 0.0 }
 0x1db   : > { %v811_v11 = vmax.f32 %v705_v7, 0.0 }
 0x1dc   : > { %v809_v13 = vmax.f32 %v697_v9, 0.0 }
 0x1dd   : > { %v839_v14 = vpack.c.bf16 %v811_v11, %v810_v10 }
 0x1de   : > { %v838_v15 = vpack.c.bf16 %v809_v13, %v808_v12  ;;  %v1664_v16 = vpop.f32.mrb[24].mxu1 }
 0x1df   : > { %v718_v17 = vadd.f32 %v1664_v16, %v2221_v35  ;;  %v709_v18 = vpop.f32.mrb[25].mxu1 }
 0x1e0   : > { %v710_v19 = vadd.f32 %v2221_v35, %v709_v18  ;;  %v1665_v20 = vpop.f32.mrb[26].mxu1  ;;  %1706 = vmatprep.mubr.bf16.mxu0 %v838_v15 }
 0x1e1   : > { %v721_v21 = vadd.f32 %v1665_v20, %v2221_v35  ;;  %v712_v22 = vpop.f32.mrb[27].mxu1  ;;  %1707 = vmatmul.mubr.bf16.gmra.mrb[20].mxu0 %v839_v14  ;;  %v814_v24 = vmax.f32 %v718_v17, 0.0 }
 0x1e2   : > { %v713_v23 = vadd.f32 %v2221_v35, %v712_v22  ;;  %v812_v26 = vmax.f32 %v710_v19, 0.0 }
 0x1e3   : > { %v815_v25 = vmax.f32 %v721_v21, 0.0 }
 0x1e4   : > { %v813_v27 = vmax.f32 %v713_v23, 0.0 }
 0x1e5   : > { %v841_v28 = vpack.c.bf16 %v815_v25, %v814_v24 }
 0x1e6   : > { %v840_v29 = vpack.c.bf16 %v813_v27, %v812_v26  ;;  %v1668_v30 = vpop.f32.mrb[28].mxu1 }
 0x1e7   : > { %v734_v31 = vadd.f32 %v1668_v30, %v2221_v35  ;;  %v725_v32 = vpop.f32.mrb[29].mxu1 }
 0x1e8   : > { %v726_v33 = vadd.f32 %v2221_v35, %v725_v32  ;;  %v1669_v34 = vpop.f32.mrb[30].mxu1  ;;  %1710 = vmatprep.mubr.bf16.mxu0 %v840_v29 }
 0x1e9   : > { %v737_v36 = vadd.f32 %v1669_v34, %v2221_v35  ;;  %v728_v38 = vpop.f32.mrb[31].mxu1  ;;  %1711 = vmatmul.mubr.bf16.gmra.mrb[24].mxu0 %v841_v28  ;;  %v818_v40 = vmax.f32 %v734_v31, 0.0 }
 0x1ea   : > { %v729_v39 = vadd.f32 %v2221_v35, %v728_v38  ;;  %v816_v42 = vmax.f32 %v726_v33, 0.0 }
 0x1eb   : > { %v819_v41 = vmax.f32 %v737_v36, 0.0 }
 0x1ec   : > { %v817_v43 = vmax.f32 %v729_v39, 0.0  ;;  %v2258_v39 = vld [vmem:[%s2652_s4 + $0x2] ss:$0 sm:$0xff] }
 0x1ed   : > { %v843_v44 = vpack.c.bf16 %v819_v41, %v818_v40 }
 0x1ee   : > { %v842_v45 = vpack.c.bf16 %v817_v43, %v816_v42  ;;  %v1672_v46 = vpop.f32.mrb[32].mxu1 }
 0x1ef   : > { %v750_v47 = vadd.f32 %v1672_v46, %v2221_v35  ;;  %v741_v48 = vpop.f32.mrb[33].mxu1 }
 0x1f0   : > { %v742_v49 = vadd.f32 %v2221_v35, %v741_v48  ;;  %v1673_v50 = vpop.f32.mrb[34].mxu1  ;;  %1714 = vmatprep.mubr.bf16.mxu0 %v842_v45 }
 0x1f1   : > { %v753_v63 = vadd.f32 %v1673_v50, %v2221_v35  ;;  %v744_v37 = vpop.f32.mrb[35].mxu1  ;;  %1715 = vmatmul.mubr.bf16.gmra.mrb[28].mxu0 %v843_v44  ;;  %v822_v52 = vmax.f32 %v750_v47, 0.0 }
 0x1f2   : > { %v745_v51 = vadd.f32 %v2221_v35, %v744_v37  ;;  %v820_v54 = vmax.f32 %v742_v49, 0.0 }
 0x1f3   : > { %v823_v53 = vmax.f32 %v753_v63, 0.0 }
 0x1f4   : > { %v821_v55 = vmax.f32 %v745_v51, 0.0 }
 0x1f5   : > { %v845_v56 = vpack.c.bf16 %v823_v53, %v822_v52 }
 0x1f6   : > { %v844_v57 = vpack.c.bf16 %v821_v55, %v820_v54  ;;  %v1676_v58 = vpop.f32.mrb[36].mxu1 }
 0x1f7   : > { %v766_v59 = vadd.f32 %v1676_v58, %v2221_v35  ;;  %v757_v60 = vpop.f32.mrb[37].mxu1 }
 0x1f8   : > { %v758_v61 = vadd.f32 %v2221_v35, %v757_v60  ;;  %v1677_v62 = vpop.f32.mrb[38].mxu1  ;;  %1718 = vmatprep.mubr.bf16.mxu0 %v844_v57 }
 0x1f9   : > { %v769_v0 = vadd.f32 %v1677_v62, %v2221_v35  ;;  %v760_v1 = vpop.f32.mrb[39].mxu1  ;;  %1719 = vmatmul.mubr.bf16.gmra.mrb[32].mxu0 %v845_v56  ;;  %v826_v3 = vmax.f32 %v766_v59, 0.0 }
 0x1fa   : > { %v761_v2 = vadd.f32 %v2221_v35, %v760_v1  ;;  %v824_v5 = vmax.f32 %v758_v61, 0.0 }
 0x1fb   : > { %v827_v4 = vmax.f32 %v769_v0, 0.0 }
 0x1fc   : > { %v825_v6 = vmax.f32 %v761_v2, 0.0 }
 0x1fd   : > { %v847_v7 = vpack.c.bf16 %v827_v4, %v826_v3 }
 0x1fe   : > { %v846_v8 = vpack.c.bf16 %v825_v6, %v824_v5  ;;  %v1680_v9 = vpop.f32.mrb[40].mxu1 }
 0x1ff   : > { %v782_v10 = vadd.f32 %v1680_v9, %v2221_v35  ;;  %v773_v11 = vpop.f32.mrb[41].mxu1 }
 0x200   : > { %v774_v12 = vadd.f32 %v2221_v35, %v773_v11  ;;  %v1681_v13 = vpop.f32.mrb[42].mxu1  ;;  %1722 = vmatprep.mubr.bf16.mxu0 %v846_v8 }
 0x201   : > { %v785_v14 = vadd.f32 %v1681_v13, %v2221_v35  ;;  %v776_v15 = vpop.f32.mrb[43].mxu1  ;;  %1723 = vmatmul.mubr.bf16.gmra.mrb[36].mxu0 %v847_v7  ;;  %v830_v17 = vmax.f32 %v782_v10, 0.0 }
 0x202   : > { %v777_v16 = vadd.f32 %v2221_v35, %v776_v15  ;;  %v828_v19 = vmax.f32 %v774_v12, 0.0 }
 0x203   : > { %v831_v18 = vmax.f32 %v785_v14, 0.0 }
 0x204   : > { %v829_v20 = vmax.f32 %v777_v16, 0.0 }
 0x205   : > { %v849_v21 = vpack.c.bf16 %v831_v18, %v830_v17 }
 0x206   : > { %v848_v22 = vpack.c.bf16 %v829_v20, %v828_v19  ;;  %v1684_v23 = vpop.f32.mrb[44].mxu1 }
 0x207   : > { %v798_v24 = vadd.f32 %v1684_v23, %v2221_v35  ;;  %v789_v25 = vpop.f32.mrb[45].mxu1 }
 0x208   : > { %v790_v26 = vadd.f32 %v2221_v35, %v789_v25  ;;  %v1685_v27 = vpop.f32.mrb[46].mxu1  ;;  %1726 = vmatprep.mubr.bf16.mxu0 %v848_v22 }
 0x209   : > { %v801_v28 = vadd.f32 %v1685_v27, %v2221_v35  ;;  %v792_v29 = vpop.f32.mrb[47].mxu1  ;;  %1727 = vmatmul.mubr.bf16.gmra.mrb[40].mxu0 %v849_v21  ;;  %v834_v31 = vmax.f32 %v798_v24, 0.0 }
 0x20a   : > { %v793_v30 = vadd.f32 %v2221_v35, %v792_v29  ;;  %v832_v33 = vmax.f32 %v790_v26, 0.0 }
 0x20b   : > { %v835_v32 = vmax.f32 %v801_v28, 0.0 }
 0x20c   : > { %v833_v34 = vmax.f32 %v793_v30, 0.0 }
 0x20d   : > { %v851_v36 = vpack.c.bf16 %v835_v32, %v834_v31 }
 0x20e   : > { %v850_v38 = vpack.c.bf16 %v833_v34, %v832_v33 }
 0x210   : > { %1730 = vmatprep.mubr.bf16.mxu0 %v850_v38 }
 0x211   : > { %1731 = vmatmul.mubr.bf16.gmra.mrb[44].mxu0 %v851_v36 }
 0x2ac   : > { %v1704_v40 = vpop.f32.mrb[16].mxu0 }
 0x2ad   : > { %v2261_v41 = vadd.f32 %v1704_v40, %v2258_v39  ;;  %v957_v42 = vpop.f32.mrb[17].mxu0 }
 0x2ae   : > { %v2264_v35 = vadd.f32 %v2258_v39, %v957_v42  ;;  %v1705_v43 = vpop.f32.mrb[18].mxu0 }
 0x2af   : > { %1088 = vmax.xlane.f32.xlu1 %v2261_v41  ;;  %v960_v44 = vpop.f32.mrb[19].mxu0  ;;  %v2269_v45 = vadd.f32 %v1705_v43, %v2258_v39 }
 0x2b0   : > { %1084 = vmax.xlane.f32.xlu0 %v2264_v35  ;;  %v2272_v46 = vadd.f32 %v2258_v39, %v960_v44 }
 0x2b3   : > { %1090 = vmax.xlane.f32.xlu1 %v2269_v45 }
 0x2b4   : > { %v1708_v47 = vpop.f32.mrb[20].mxu0  ;;  %1086 = vmax.xlane.f32.xlu0 %v2272_v46 }
 0x2b5   : > { %v2277_v48 = vadd.f32 %v1708_v47, %v2258_v39  ;;  %v973_v49 = vpop.f32.mrb[21].mxu0 }
 0x2b6   : > { %v1709_v50 = vpop.f32.mrb[22].mxu0  ;;  %v2285_v51 = vadd.f32 %v2258_v39, %v973_v49 }
 0x2b7   : > { %v2280_v63 = vadd.f32 %v1709_v50, %v2258_v39  ;;  %v976_v37 = vpop.f32.mrb[23].mxu0 }
 0x2b8   : > { %1096 = vmax.xlane.f32.xlu0 %v2277_v48  ;;  %v2288_v52 = vadd.f32 %v2258_v39, %v976_v37 }
 0x2b9   : > { %1098 = vmax.xlane.f32.xlu1 %v2280_v63 }
 0x2bc   : > { %v1712_v53 = vpop.f32.mrb[24].mxu0  ;;  %1092 = vmax.xlane.f32.xlu0 %v2285_v51 }
 0x2bd   : > { %v2292_v54 = vadd.f32 %v1712_v53, %v2258_v39  ;;  %v989_v55 = vpop.f32.mrb[25].mxu0  ;;  %1094 = vmax.xlane.f32.xlu1 %v2288_v52 }
 0x2be   : > { %v1713_v56 = vpop.f32.mrb[26].mxu0  ;;  %v2301_v59 = vadd.f32 %v2258_v39, %v989_v55 }
 0x2bf   : > { %v2296_v57 = vadd.f32 %v1713_v56, %v2258_v39  ;;  %v992_v58 = vpop.f32.mrb[27].mxu0 }
 0x2c0   : > { %1104 = vmax.xlane.f32.xlu0 %v2292_v54  ;;  %v2304_v60 = vadd.f32 %v2258_v39, %v992_v58 }
 0x2c1   : > { %1106 = vmax.xlane.f32.xlu1 %v2296_v57 }
 0x2c4   : > { %v1716_v61 = vpop.f32.mrb[28].mxu0  ;;  %1100 = vmax.xlane.f32.xlu0 %v2301_v59 }
 0x2c5   : > { %v2308_v62 = vadd.f32 %v1716_v61, %v2258_v39  ;;  %v1005_v0 = vpop.f32.mrb[29].mxu0  ;;  %1102 = vmax.xlane.f32.xlu1 %v2304_v60 }
 0x2c6   : > { %v1717_v1 = vpop.f32.mrb[30].mxu0  ;;  %v2317_v4 = vadd.f32 %v2258_v39, %v1005_v0 }
 0x2c7   : > { %v2312_v2 = vadd.f32 %v1717_v1, %v2258_v39  ;;  %v1008_v3 = vpop.f32.mrb[31].mxu0 }
 0x2c8   : > { %1112 = vmax.xlane.f32.xlu0 %v2308_v62  ;;  %v2320_v5 = vadd.f32 %v2258_v39, %v1008_v3 }
 0x2c9   : > { %1114 = vmax.xlane.f32.xlu1 %v2312_v2 }
 0x2cc   : > { %v1720_v6 = vpop.f32.mrb[32].mxu0  ;;  %1108 = vmax.xlane.f32.xlu0 %v2317_v4 }
 0x2cd   : > { %v2324_v7 = vadd.f32 %v1720_v6, %v2258_v39  ;;  %v1021_v8 = vpop.f32.mrb[33].mxu0  ;;  %1110 = vmax.xlane.f32.xlu1 %v2320_v5 }
 0x2ce   : > { %v1721_v9 = vpop.f32.mrb[34].mxu0  ;;  %v2333_v12 = vadd.f32 %v2258_v39, %v1021_v8 }
 0x2cf   : > { %v2328_v10 = vadd.f32 %v1721_v9, %v2258_v39  ;;  %v1024_v11 = vpop.f32.mrb[35].mxu0 }
 0x2d0   : > { %1120 = vmax.xlane.f32.xlu0 %v2324_v7  ;;  %v2336_v13 = vadd.f32 %v2258_v39, %v1024_v11 }
 0x2d1   : > { %1122 = vmax.xlane.f32.xlu1 %v2328_v10 }
 0x2d4   : > { %v1724_v14 = vpop.f32.mrb[36].mxu0  ;;  %1116 = vmax.xlane.f32.xlu0 %v2333_v12 }
 0x2d5   : > { %v2340_v15 = vadd.f32 %v1724_v14, %v2258_v39  ;;  %v1037_v16 = vpop.f32.mrb[37].mxu0  ;;  %1118 = vmax.xlane.f32.xlu1 %v2336_v13 }
 0x2d6   : > { %v1725_v17 = vpop.f32.mrb[38].mxu0  ;;  %v2349_v20 = vadd.f32 %v2258_v39, %v1037_v16 }
 0x2d7   : > { %v2344_v18 = vadd.f32 %v1725_v17, %v2258_v39  ;;  %v1040_v19 = vpop.f32.mrb[39].mxu0 }
 0x2d8   : > { %1128 = vmax.xlane.f32.xlu0 %v2340_v15  ;;  %v2352_v21 = vadd.f32 %v2258_v39, %v1040_v19 }
 0x2d9   : > { %1130 = vmax.xlane.f32.xlu1 %v2344_v18 }
 0x2dc   : > { %v1728_v22 = vpop.f32.mrb[40].mxu0  ;;  %1124 = vmax.xlane.f32.xlu0 %v2349_v20 }
 0x2dd   : > { %v2356_v23 = vadd.f32 %v1728_v22, %v2258_v39  ;;  %v1053_v24 = vpop.f32.mrb[41].mxu0  ;;  %1126 = vmax.xlane.f32.xlu1 %v2352_v21 }
 0x2de   : > { %v1729_v25 = vpop.f32.mrb[42].mxu0  ;;  %v2365_v28 = vadd.f32 %v2258_v39, %v1053_v24 }
 0x2df   : > { %v2360_v26 = vadd.f32 %v1729_v25, %v2258_v39  ;;  %v1056_v27 = vpop.f32.mrb[43].mxu0 }
 0x2e0   : > { %1136 = vmax.xlane.f32.xlu0 %v2356_v23  ;;  %v2368_v29 = vadd.f32 %v2258_v39, %v1056_v27 }
 0x2e1   : > { %1138 = vmax.xlane.f32.xlu1 %v2360_v26 }
 0x2e4   : > { %v1732_v30 = vpop.f32.mrb[44].mxu0  ;;  %1132 = vmax.xlane.f32.xlu0 %v2365_v28 }
 0x2e5   : > { %v1069_v31 = vpop.f32.mrb[45].mxu0  ;;  %1134 = vmax.xlane.f32.xlu1 %v2368_v29  ;;  %v2380_v38 = vadd.f32 %v1732_v30, %v2258_v39 }
 0x2e6   : > { %v2373_v32 = vadd.f32 %v2258_v39, %v1069_v31  ;;  %v1733_v33 = vpop.f32.mrb[46].mxu0 }
 0x2e7   : > { %v1072_v34 = vpop.f32.mrb[47].mxu0  ;;  %v2384_v40 = vadd.f32 %v1733_v33, %v2258_v39 }
 0x2e8   : > { %v2376_v36 = vadd.f32 %v2258_v39, %v1072_v34  ;;  %1140 = vmax.xlane.f32.xlu0 %v2373_v32 }
 0x2ea   : > { %1142 = vmax.xlane.f32.xlu1 %v2376_v36 }
 0x2ec   : > { %1144 = vmax.xlane.f32.xlu0 %v2380_v38 }
 0x2ee   : > { %1146 = vmax.xlane.f32.xlu1 %v2384_v40 }
 0x33c   : > { %v1089_v42 = vpop.xlane.xlu1 %1088 }
 0x33d   : > { %v1150_v43 = vsub.f32 %v2261_v41, %v1089_v42  ;;  %v1085_v44 = vpop.xlane.xlu0 %1084 }
 0x33e   : > { %v1148_v47 = vsub.f32 %v2264_v35, %v1085_v44 }
 0x33f   : > { %v1184_v49 = vmul.f32 1.442695, %v1150_v43 }
 0x340   : > { %v1180_v50 = vmul.f32 1.442695, %v1148_v47  ;;  %v1091_v37 = vpop.xlane.xlu1 %1090 }
 0x341   : > { %1793 = vpow2.f32 %v1184_v49  ;;  %v1151_v53 = vsub.f32 %v2269_v45, %v1091_v37  ;;  %v1087_v55 = vpop.xlane.xlu0 %1086 }
 0x342   : > { %v1149_v39 = vsub.f32 %v2272_v46, %v1087_v55  ;;  %1795 = vpow2.f32 %v1180_v50 }
 0x343   : > { %v1186_v56 = vmul.f32 1.442695, %v1151_v53 }
 0x344   : > { %v1182_v58 = vmul.f32 1.442695, %v1149_v39 }
 0x345   : > { %1797 = vpow2.f32 %v1186_v56  ;;  %v1097_v61 = vpop.xlane.xlu0 %1096 }
 0x346   : > { %v1154_v0 = vsub.f32 %v2277_v48, %v1097_v61  ;;  %v1099_v41 = vpop.xlane.xlu1 %1098  ;;  %1799 = vpow2.f32 %v1182_v58 }
 0x347   : > { %v1155_v1 = vsub.f32 %v2280_v63, %v1099_v41 }
 0x348   : > { %v1192_v35 = vmul.f32 1.442695, %v1154_v0 }
 0x349   : > { %v1194_v3 = vmul.f32 1.442695, %v1155_v1  ;;  %v1093_v6 = vpop.xlane.xlu0 %1092 }
 0x34a   : > { %1801 = vpow2.f32 %v1192_v35  ;;  %v1152_v45 = vsub.f32 %v2285_v51, %v1093_v6  ;;  %v1095_v8 = vpop.xlane.xlu1 %1094 }
 0x34b   : > { %v2395_v9 = vpop.eup %1793  ;;  %v1153_v46 = vsub.f32 %v2288_v52, %v1095_v8  ;;  %1803 = vpow2.f32 %v1194_v3 }
 0x34c   : > { %v1188_v11 = vmul.f32 1.442695, %v1152_v45  ;;  %1248 = vadd.xlane.f32.xlu0 %v2395_v9  ;;  %v2399_v16 = vpop.eup %1795 }
 0x34d   : > { %v1190_v48 = vmul.f32 1.442695, %v1153_v46  ;;  %v1105_v14 = vpop.xlane.xlu0 %1104 }
 0x34e   : > { %1805 = vpow2.f32 %v1188_v11  ;;  %v1158_v63 = vsub.f32 %v2292_v54, %v1105_v14  ;;  %v1107_v17 = vpop.xlane.xlu1 %1106 }
 0x34f   : > { %v2402_v19 = vpop.eup %1797  ;;  %v1159_v51 = vsub.f32 %v2296_v57, %v1107_v17  ;;  %1807 = vpow2.f32 %v1190_v48 }
 0x350   : > { %v1200_v22 = vmul.f32 1.442695, %v1158_v63  ;;  %1250 = vadd.xlane.f32.xlu1 %v2402_v19  ;;  %1244 = vadd.xlane.f32.xlu0 %v2399_v16  ;;  %v2408_v30 = vpop.eup %1799 }
 0x351   : > { %v1202_v52 = vmul.f32 1.442695, %v1159_v51  ;;  %v1101_v24 = vpop.xlane.xlu0 %1100 }
 0x352   : > { %1809 = vpow2.f32 %v1200_v22  ;;  %v1156_v25 = vsub.f32 %v2301_v59, %v1101_v24  ;;  %v1103_v27 = vpop.xlane.xlu1 %1102 }
 0x353   : > { %v1157_v54 = vsub.f32 %v2304_v60, %v1103_v27  ;;  %1811 = vpow2.f32 %v1202_v52 }
 0x354   : > { %v2411_v31 = vpop.eup %1801  ;;  %v1196_v33 = vmul.f32 1.442695, %v1156_v25  ;;  %1246 = vadd.xlane.f32.xlu1 %v2408_v30 }
 0x355   : > { %v1198_v57 = vmul.f32 1.442695, %v1157_v54  ;;  %1256 = vadd.xlane.f32.xlu0 %v2411_v31  ;;  %v1113_v34 = vpop.xlane.xlu0 %1112  ;;  %v2416_v59 = vpop.eup %1803 }
 0x356   : > { %1813 = vpow2.f32 %v1196_v33  ;;  %v1162_v42 = vsub.f32 %v2308_v62, %v1113_v34  ;;  %v1115_v43 = vpop.xlane.xlu1 %1114 }
 0x357   : > { %v1163_v44 = vsub.f32 %v2312_v2, %v1115_v43  ;;  %1815 = vpow2.f32 %v1198_v57 }
 0x358   : > { %v2419_v47 = vpop.eup %1805  ;;  %v1208_v60 = vmul.f32 1.442695, %v1162_v42  ;;  %1258 = vadd.xlane.f32.xlu1 %v2416_v59 }
 0x359   : > { %v1210_v49 = vmul.f32 1.442695, %v1163_v44  ;;  %1252 = vadd.xlane.f32.xlu0 %v2419_v47  ;;  %v1109_v50 = vpop.xlane.xlu0 %1108  ;;  %v2424_v62 = vpop.eup %1807 }
 0x35a   : > { %1817 = vpow2.f32 %v1208_v60  ;;  %v1160_v37 = vsub.f32 %v2317_v4, %v1109_v50  ;;  %v1111_v53 = vpop.xlane.xlu1 %1110 }
 0x35b   : > { %v1161_v55 = vsub.f32 %v2320_v5, %v1111_v53  ;;  %1819 = vpow2.f32 %v1210_v49 }
 0x35c   : > { %v2427_v39 = vpop.eup %1809  ;;  %v1204_v2 = vmul.f32 1.442695, %v1160_v37  ;;  %1254 = vadd.xlane.f32.xlu1 %v2424_v62 }
 0x35d   : > { %v1206_v56 = vmul.f32 1.442695, %v1161_v55  ;;  %1264 = vadd.xlane.f32.xlu0 %v2427_v39  ;;  %v1121_v58 = vpop.xlane.xlu0 %1120  ;;  %v2432_v4 = vpop.eup %1811 }
 0x35e   : > { %1821 = vpow2.f32 %v1204_v2  ;;  %v1166_v61 = vsub.f32 %v2324_v7, %v1121_v58  ;;  %v1123_v0 = vpop.xlane.xlu1 %1122 }
 0x35f   : > { %v1167_v41 = vsub.f32 %v2328_v10, %v1123_v0  ;;  %1823 = vpow2.f32 %v1206_v56 }
 0x360   : > { %v2435_v1 = vpop.eup %1813  ;;  %v1216_v5 = vmul.f32 1.442695, %v1166_v61  ;;  %1266 = vadd.xlane.f32.xlu1 %v2432_v4 }
 0x361   : > { %v1218_v35 = vmul.f32 1.442695, %v1167_v41  ;;  %1260 = vadd.xlane.f32.xlu0 %v2435_v1  ;;  %v1117_v3 = vpop.xlane.xlu0 %1116  ;;  %v2440_v45 = vpop.eup %1815 }
 0x362   : > { %1825 = vpow2.f32 %v1216_v5  ;;  %v1164_v6 = vsub.f32 %v2333_v12, %v1117_v3  ;;  %v1119_v7 = vpop.xlane.xlu1 %1118 }
 0x363   : > { %v1165_v8 = vsub.f32 %v2336_v13, %v1119_v7  ;;  %1827 = vpow2.f32 %v1218_v35 }
 0x364   : > { %v2443_v10 = vpop.eup %1817  ;;  %v1212_v46 = vmul.f32 1.442695, %v1164_v6  ;;  %1262 = vadd.xlane.f32.xlu1 %v2440_v45 }
 0x365   : > { %v1214_v11 = vmul.f32 1.442695, %v1165_v8  ;;  %1272 = vadd.xlane.f32.xlu0 %v2443_v10  ;;  %v1129_v48 = vpop.xlane.xlu0 %1128  ;;  %v2449_v12 = vpop.eup %1819 }
 0x366   : > { %1829 = vpow2.f32 %v1212_v46  ;;  %v1170_v14 = vsub.f32 %v2340_v15, %v1129_v48  ;;  %v1131_v63 = vpop.xlane.xlu1 %1130 }
 0x367   : > { %v1171_v17 = vsub.f32 %v2344_v18, %v1131_v63  ;;  %1831 = vpow2.f32 %v1214_v11 }
 0x368   : > { %v2452_v13 = vpop.eup %1821  ;;  %v1224_v51 = vmul.f32 1.442695, %v1170_v14  ;;  %1274 = vadd.xlane.f32.xlu1 %v2449_v12 }
 0x369   : > { %v1226_v22 = vmul.f32 1.442695, %v1171_v17  ;;  %1268 = vadd.xlane.f32.xlu0 %v2452_v13  ;;  %v1125_v52 = vpop.xlane.xlu0 %1124  ;;  %v2457_v25 = vpop.eup %1823 }
 0x36a   : > { %1833 = vpow2.f32 %v1224_v51  ;;  %v1168_v24 = vsub.f32 %v2349_v20, %v1125_v52  ;;  %v1127_v15 = vpop.xlane.xlu1 %1126 }
 0x36b   : > { %v1169_v27 = vsub.f32 %v2352_v21, %v1127_v15  ;;  %1835 = vpow2.f32 %v1226_v22 }
 0x36c   : > { %v2460_v54 = vpop.eup %1825  ;;  %v1220_v18 = vmul.f32 1.442695, %v1168_v24  ;;  %1270 = vadd.xlane.f32.xlu1 %v2457_v25 }
 0x36d   : > { %v1222_v33 = vmul.f32 1.442695, %v1169_v27  ;;  %1280 = vadd.xlane.f32.xlu0 %v2460_v54  ;;  %v1137_v57 = vpop.xlane.xlu0 %1136  ;;  %v2465_v20 = vpop.eup %1827 }
 0x36e   : > { %1837 = vpow2.f32 %v1220_v18  ;;  %v1174_v34 = vsub.f32 %v2356_v23, %v1137_v57  ;;  %v1139_v42 = vpop.xlane.xlu1 %1138 }
 0x36f   : > { %v1175_v43 = vsub.f32 %v2360_v26, %v1139_v42  ;;  %1839 = vpow2.f32 %v1222_v33 }
 0x370   : > { %v2468_v44 = vpop.eup %1829  ;;  %v1232_v21 = vmul.f32 1.442695, %v1174_v34  ;;  %1282 = vadd.xlane.f32.xlu1 %v2465_v20 }
 0x371   : > { %v1234_v60 = vmul.f32 1.442695, %v1175_v43  ;;  %1276 = vadd.xlane.f32.xlu0 %v2468_v44  ;;  %v1133_v49 = vpop.xlane.xlu0 %1132  ;;  %v2473_v23 = vpop.eup %1831 }
 0x372   : > { %1841 = vpow2.f32 %v1232_v21  ;;  %v1172_v50 = vsub.f32 %v2365_v28, %v1133_v49  ;;  %v1135_v37 = vpop.xlane.xlu1 %1134 }
 0x373   : > { %v1173_v53 = vsub.f32 %v2368_v29, %v1135_v37  ;;  %1843 = vpow2.f32 %v1234_v60 }
 0x374   : > { %v2476_v55 = vpop.eup %1833  ;;  %v1228_v26 = vmul.f32 1.442695, %v1172_v50  ;;  %1278 = vadd.xlane.f32.xlu1 %v2473_v23 }
 0x375   : > { %v1230_v2 = vmul.f32 1.442695, %v1173_v53  ;;  %1288 = vadd.xlane.f32.xlu0 %v2476_v55  ;;  %v1141_v56 = vpop.xlane.xlu0 %1140  ;;  %v2481_v61 = vpop.eup %1835 }
 0x376   : > { %1845 = vpow2.f32 %v1228_v26  ;;  %v1176_v58 = vsub.f32 %v2373_v32, %v1141_v56 }
 0x377   : > { %v1143_v28 = vpop.xlane.xlu1 %1142  ;;  %1847 = vpow2.f32 %v1230_v2 }
 0x378   : > { %v2483_v0 = vpop.eup %1837  ;;  %v1236_v41 = vmul.f32 1.442695, %v1176_v58  ;;  %v1177_v29 = vsub.f32 %v2376_v36, %v1143_v28  ;;  %1290 = vadd.xlane.f32.xlu1 %v2481_v61 }
 0x379   : > { %1284 = vadd.xlane.f32.xlu0 %v2483_v0  ;;  %v1145_v5 = vpop.xlane.xlu0 %1144  ;;  %v2489_v6 = vpop.eup %1839 }
 0x37a   : > { %1849 = vpow2.f32 %v1236_v41  ;;  %v1238_v35 = vmul.f32 1.442695, %v1177_v29  ;;  %v1178_v3 = vsub.f32 %v2380_v38, %v1145_v5 }
 0x37b   : > { %v1147_v32 = vpop.xlane.xlu1 %1146 }
 0x37c   : > { %v2491_v7 = vpop.eup %1841  ;;  %1851 = vpow2.f32 %v1238_v35  ;;  %v1240_v8 = vmul.f32 1.442695, %v1178_v3  ;;  %v1179_v46 = vsub.f32 %v2384_v40, %v1147_v32  ;;  %1286 = vadd.xlane.f32.xlu1 %v2489_v6 }
 0x37d   : > { %1296 = vadd.xlane.f32.xlu0 %v2491_v7  ;;  %v2496_v11 = vpop.eup %1843 }
 0x37e   : > { %1853 = vpow2.f32 %v1240_v8  ;;  %v1242_v36 = vmul.f32 1.442695, %v1179_v46 }
 0x380   : > { %v2498_v48 = vpop.eup %1845  ;;  %1855 = vpow2.f32 %v1242_v36  ;;  %1298 = vadd.xlane.f32.xlu1 %v2496_v11 }
 0x381   : > { %1292 = vadd.xlane.f32.xlu0 %v2498_v48  ;;  %v2502_v38 = vpop.eup %1847 }
 0x384   : > { %v2504_v14 = vpop.eup %1849  ;;  %1294 = vadd.xlane.f32.xlu1 %v2502_v38 }
 0x385   : > { %1300 = vadd.xlane.f32.xlu0 %v2504_v14 }
 0x386   : > { %v2508_v40 = vpop.eup %1851 }
 0x388   : > { %v2510_v63 = vpop.eup %1853  ;;  %1302 = vadd.xlane.f32.xlu1 %v2508_v40 }
 0x389   : > { %1304 = vadd.xlane.f32.xlu0 %v2510_v63 }
 0x38a   : > { %v2514_v17 = vpop.eup %1855 }
 0x38c   : > { %1306 = vadd.xlane.f32.xlu1 %v2514_v17 }
 0x3d9   : > { %v1249_v51 = vpop.xlane.xlu0 %1248 }
 0x3da   : > { %1857 = vrcp.f32 %v1249_v51 }
 0x3dd   : > { %v1251_v22 = vpop.xlane.xlu1 %1250  ;;  %v1245_v52 = vpop.xlane.xlu0 %1244 }
 0x3de   : > { %1859 = vrcp.f32 %v1251_v22 }
 0x3df   : > { %1861 = vrcp.f32 %v1245_v52 }
 0x3e1   : > { %v1247_v24 = vpop.xlane.xlu1 %1246 }
 0x3e2   : > { %1863 = vrcp.f32 %v1247_v24  ;;  %v1257_v15 = vpop.xlane.xlu0 %1256 }
 0x3e3   : > { %1865 = vrcp.f32 %v1257_v15 }
 0x3e4   : > { %v1858_v27 = vpop.eup %1857 }
 0x3e5   : > { %v1342_v18 = vmul.f32 %v1858_v27, %v2395_v9  ;;  %v1259_v33 = vpop.xlane.xlu1 %1258 }
 0x3e6   : > { %1867 = vrcp.f32 %v1259_v33  ;;  %v1253_v57 = vpop.xlane.xlu0 %1252 }
 0x3e7   : > { %1374 = vst [vmem:[%s2520_s8 + $0x10] sm:$0xff] %v1342_v18  ;;  %1869 = vrcp.f32 %v1253_v57 }
 0x3e8   : > { %v1860_v34 = vpop.eup %1859 }
 0x3e9   : > { %v1862_v42 = vpop.eup %1861  ;;  %v1343_v43 = vmul.f32 %v1860_v34, %v2402_v19  ;;  %v1255_v21 = vpop.xlane.xlu1 %1254 }
 0x3ea   : > { %v1340_v60 = vmul.f32 %v1862_v42, %v2399_v16  ;;  %1871 = vrcp.f32 %v1255_v21  ;;  %v1265_v9 = vpop.xlane.xlu0 %1264 }
 0x3eb   : > { %1375 = vst [vmem:[%s2520_s8 + $0x18] sm:$0xff] %v1343_v43  ;;  %1873 = vrcp.f32 %v1265_v9 }
 0x3ec   : > { %v1864_v49 = vpop.eup %1863  ;;  %1372 = vst [vmem:[%s2520_s8] sm:$0xff] %v1340_v60 }
 0x3ed   : > { %v1866_v50 = vpop.eup %1865  ;;  %v1341_v37 = vmul.f32 %v1864_v49, %v2408_v30  ;;  %v1267_v53 = vpop.xlane.xlu1 %1266 }
 0x3ee   : > { %v1346_v26 = vmul.f32 %v1866_v50, %v2411_v31  ;;  %1875 = vrcp.f32 %v1267_v53  ;;  %v1261_v19 = vpop.xlane.xlu0 %1260 }
 0x3ef   : > { %1373 = vst [vmem:[%s2520_s8 + $0x8] sm:$0xff] %v1341_v37  ;;  %1877 = vrcp.f32 %v1261_v19 }
 0x3f0   : > { %v1868_v16 = vpop.eup %1867  ;;  %1378 = vst [vmem:[%s2520_s8 + $0x30] sm:$0xff] %v1346_v26 }
 0x3f1   : > { %v1870_v2 = vpop.eup %1869  ;;  %v1347_v56 = vmul.f32 %v1868_v16, %v2416_v59  ;;  %v1263_v58 = vpop.xlane.xlu1 %1262 }
 0x3f2   : > { %v1344_v28 = vmul.f32 %v1870_v2, %v2419_v47  ;;  %1879 = vrcp.f32 %v1263_v58  ;;  %v1273_v30 = vpop.xlane.xlu0 %1272 }
 0x3f3   : > { %1379 = vst [vmem:[%s2520_s8 + $0x38] sm:$0xff] %v1347_v56  ;;  %1881 = vrcp.f32 %v1273_v30 }
 0x3f4   : > { %v1872_v31 = vpop.eup %1871  ;;  %1376 = vst [vmem:[%s2520_s8 + $0x20] sm:$0xff] %v1344_v28 }
 0x3f5   : > { %v1874_v41 = vpop.eup %1873  ;;  %v1345_v29 = vmul.f32 %v1872_v31, %v2424_v62  ;;  %v1275_v5 = vpop.xlane.xlu1 %1274 }
 0x3f6   : > { %v1350_v35 = vmul.f32 %v1874_v41, %v2427_v39  ;;  %1883 = vrcp.f32 %v1275_v5  ;;  %v1269_v59 = vpop.xlane.xlu0 %1268 }
 0x3f7   : > { %1377 = vst [vmem:[%s2520_s8 + $0x28] sm:$0xff] %v1345_v29  ;;  %1885 = vrcp.f32 %v1269_v59 }
 0x3f8   : > { %v1876_v47 = vpop.eup %1875  ;;  %1382 = vst [vmem:[%s2520_s8 + $0x50] sm:$0xff] %v1350_v35 }
 0x3f9   : > { %v1878_v3 = vpop.eup %1877  ;;  %v1351_v32 = vmul.f32 %v1876_v47, %v2432_v4  ;;  %v1271_v8 = vpop.xlane.xlu1 %1270 }
 0x3fa   : > { %v1348_v46 = vmul.f32 %v1878_v3, %v2435_v1  ;;  %1887 = vrcp.f32 %v1271_v8  ;;  %v1281_v62 = vpop.xlane.xlu0 %1280 }
 0x3fb   : > { %1383 = vst [vmem:[%s2520_s8 + $0x58] sm:$0xff] %v1351_v32  ;;  %1889 = vrcp.f32 %v1281_v62 }
 0x3fc   : > { %v1880_v39 = vpop.eup %1879  ;;  %1380 = vst [vmem:[%s2520_s8 + $0x40] sm:$0xff] %v1348_v46 }
 0x3fd   : > { %v1882_v36 = vpop.eup %1881  ;;  %v1349_v51 = vmul.f32 %v1880_v39, %v2440_v45  ;;  %v1283_v22 = vpop.xlane.xlu1 %1282 }
 0x3fe   : > { %v1354_v52 = vmul.f32 %v1882_v36, %v2443_v10  ;;  %1891 = vrcp.f32 %v1283_v22  ;;  %v1277_v4 = vpop.xlane.xlu0 %1276 }
 0x3ff   : > { %1381 = vst [vmem:[%s2520_s8 + $0x48] sm:$0xff] %v1349_v51  ;;  %1893 = vrcp.f32 %v1277_v4 }
 0x400   : > { %v1884_v1 = vpop.eup %1883  ;;  %1386 = vst [vmem:[%s2520_s8 + $0x70] sm:$0xff] %v1354_v52 }
 0x401   : > { %v1886_v24 = vpop.eup %1885  ;;  %v1355_v15 = vmul.f32 %v1884_v1, %v2449_v12  ;;  %v1279_v27 = vpop.xlane.xlu1 %1278 }
 0x402   : > { %v1352_v18 = vmul.f32 %v1886_v24, %v2452_v13  ;;  %1895 = vrcp.f32 %v1279_v27  ;;  %v1289_v45 = vpop.xlane.xlu0 %1288 }
 0x403   : > { %1387 = vst [vmem:[%s2520_s8 + $0x78] sm:$0xff] %v1355_v15  ;;  %1897 = vrcp.f32 %v1289_v45 }
 0x404   : > { %v1888_v10 = vpop.eup %1887  ;;  %1384 = vst [vmem:[%s2520_s8 + $0x60] sm:$0xff] %v1352_v18 }
 0x405   : > { %v1890_v33 = vpop.eup %1889  ;;  %v1353_v57 = vmul.f32 %v1888_v10, %v2457_v25  ;;  %v1291_v34 = vpop.xlane.xlu1 %1290 }
 0x406   : > { %v1358_v42 = vmul.f32 %v1890_v33, %v2460_v54  ;;  %1899 = vrcp.f32 %v1291_v34  ;;  %v1285_v12 = vpop.xlane.xlu0 %1284 }
 0x407   : > { %1385 = vst [vmem:[%s2520_s8 + $0x68] sm:$0xff] %v1353_v57  ;;  %1901 = vrcp.f32 %v1285_v12 }
 0x408   : > { %v1892_v13 = vpop.eup %1891  ;;  %1390 = vst [vmem:[%s2520_s8 + $0x90] sm:$0xff] %v1358_v42 }
 0x409   : > { %v1894_v43 = vpop.eup %1893  ;;  %v1359_v21 = vmul.f32 %v1892_v13, %v2465_v20  ;;  %v1287_v60 = vpop.xlane.xlu1 %1286 }
 0x40a   : > { %v1356_v9 = vmul.f32 %v1894_v43, %v2468_v44  ;;  %1903 = vrcp.f32 %v1287_v60  ;;  %v1297_v25 = vpop.xlane.xlu0 %1296 }
 0x40b   : > { %1391 = vst [vmem:[%s2520_s8 + $0x98] sm:$0xff] %v1359_v21  ;;  %1905 = vrcp.f32 %v1297_v25 }
 0x40c   : > { %v1896_v54 = vpop.eup %1895  ;;  %1388 = vst [vmem:[%s2520_s8 + $0x80] sm:$0xff] %v1356_v9 }
 0x40d   : > { %v1898_v49 = vpop.eup %1897  ;;  %v1357_v50 = vmul.f32 %v1896_v54, %v2473_v23  ;;  %v1299_v37 = vpop.xlane.xlu1 %1298 }
 0x40e   : > { %v1362_v53 = vmul.f32 %v1898_v49, %v2476_v55  ;;  %1907 = vrcp.f32 %v1299_v37  ;;  %v1293_v20 = vpop.xlane.xlu0 %1292 }
 0x40f   : > { %1389 = vst [vmem:[%s2520_s8 + $0x88] sm:$0xff] %v1357_v50  ;;  %1909 = vrcp.f32 %v1293_v20 }
 0x410   : > { %v1900_v44 = vpop.eup %1899  ;;  %1394 = vst [vmem:[%s2520_s8 + $0xb0] sm:$0xff] %v1362_v53 }
 0x411   : > { %v1902_v26 = vpop.eup %1901  ;;  %v1363_v19 = vmul.f32 %v1900_v44, %v2481_v61  ;;  %v1295_v16 = vpop.xlane.xlu1 %1294 }
 0x412   : > { %v1360_v2 = vmul.f32 %v1902_v26, %v2483_v0  ;;  %1911 = vrcp.f32 %v1295_v16  ;;  %v1301_v23 = vpop.xlane.xlu0 %1300 }
 0x413   : > { %1395 = vst [vmem:[%s2520_s8 + $0xb8] sm:$0xff] %v1363_v19  ;;  %1913 = vrcp.f32 %v1301_v23 }
 0x414   : > { %v1904_v55 = vpop.eup %1903  ;;  %1392 = vst [vmem:[%s2520_s8 + $0xa0] sm:$0xff] %v1360_v2 }
 0x415   : > { %v1906_v56 = vpop.eup %1905  ;;  %v1361_v58 = vmul.f32 %v1904_v55, %v2489_v6  ;;  %v1303_v28 = vpop.xlane.xlu1 %1302 }
 0x416   : > { %v1366_v30 = vmul.f32 %v1906_v56, %v2491_v7  ;;  %1915 = vrcp.f32 %v1303_v28  ;;  %v1305_v61 = vpop.xlane.xlu0 %1304 }
 0x417   : > { %1393 = vst [vmem:[%s2520_s8 + $0xa8] sm:$0xff] %v1361_v58  ;;  %1917 = vrcp.f32 %v1305_v61 }
 0x418   : > { %v1908_v0 = vpop.eup %1907  ;;  %1398 = vst [vmem:[%s2520_s8 + $0xd0] sm:$0xff] %v1366_v30 }
 0x419   : > { %v1910_v31 = vpop.eup %1909  ;;  %v1367_v41 = vmul.f32 %v1908_v0, %v2496_v11  ;;  %v1307_v29 = vpop.xlane.xlu1 %1306 }
 0x41a   : > { %v1364_v5 = vmul.f32 %v1910_v31, %v2498_v48  ;;  %1919 = vrcp.f32 %v1307_v29 }
 0x41b   : > { %1399 = vst [vmem:[%s2520_s8 + $0xd8] sm:$0xff] %v1367_v41 }
 0x41c   : > { %v1912_v6 = vpop.eup %1911  ;;  %1396 = vst [vmem:[%s2520_s8 + $0xc0] sm:$0xff] %v1364_v5 }
 0x41d   : > { %v1914_v7 = vpop.eup %1913  ;;  %v1365_v35 = vmul.f32 %v1912_v6, %v2502_v38 }
 0x41e   : > { %v1368_v59 = vmul.f32 %v1914_v7, %v2504_v14 }
 0x41f   : > { %1397 = vst [vmem:[%s2520_s8 + $0xc8] sm:$0xff] %v1365_v35 }
 0x420   : > { %v1916_v47 = vpop.eup %1915  ;;  %1400 = vst [vmem:[%s2520_s8 + $0xe0] sm:$0xff] %v1368_v59 }
 0x421   : > { %v1918_v11 = vpop.eup %1917  ;;  %v1369_v3 = vmul.f32 %v1916_v47, %v2508_v40  ;;  %1411 = sbr.rel (!%p2056_p5) target bundleno = 1092 (0x444), region = 44 }
 0x422   : > { %v1370_v48 = vmul.f32 %v1918_v11, %v2510_v63 }
 0x423   : > { %1401 = vst [vmem:[%s2520_s8 + $0xe8] sm:$0xff] %v1369_v3 }
 0x424   : > { %v1920_v32 = vpop.eup %1919  ;;  %1402 = vst [vmem:[%s2520_s8 + $0xf0] sm:$0xff] %v1370_v48 }
 0x425   : > { %v1371_v8 = vmul.f32 %v1920_v32, %v2514_v17 }
 0x427   : > { %1403 = vst [vmem:[%s2520_s8 + $0xf8] sm:$0xff] %v1371_v8 }
 0x428   : > { %s2661_s10 = smov (!%p1414_p11, %s1413_s10), 32 }
 0x429   : > { %s2592_s11 = sshll.u32 %s2661_s10, 7 }
 0x42a   : > { %s1418_s12 = ssub.s32 4096, %s2592_s11 }
 0x42b   : > { %1419 = vsyncadd %s2587_s9, %s1418_s12  ;;  %p1532_p12 = scmp.ne.s32.totalorder %s2592_s11, 0  ;;  %s1538_s13 = sshll.u32 %s2039_s22, 12 }
 0x42c   : > { %s2601_s15 = scalar_lea.hbm %s2653_s5, %s1538_s13  ;;  %s1424_s7 = sshll.u32 %s2520_s8, 4  ;;  %s2604_s7 = int_to_ptr.vmem [resolvable:$true] %s1424_s7 }
 0x42d   : > { %s1921_s16 = scalar_lea.vmem %s2604_s7, %s2592_s11  ;;  %s1985_s17 = smov [#allocation2]  }
 0x42e   : > { %p1922_p13 = scmp.ne.s32.totalorder %s2604_s7, %s1921_s16  ;;  %s1925_s23 = sshll.u32 %s1985_s17, 4  ;;  %s1926_s23 = int_to_ptr.vmem [resolvable:$false] %s1925_s23 }
 0x42f   : > { %s1927_s22 = scalar_lea.vmem %s1926_s23, 8192  ;;  %p1928_p2 = scmp.lt.s32.totalorder %s2604_s7, %s1926_s23 }
 0x430   : > { %p1923_p0 = pnand %p1922_p13, %p1532_p12  ;;  %p1929_p3 = scmp.lt.s32.totalorder %s1927_s22, %s1921_s16 }
 0x432   : > { %p1924_p1 = pneg %p1923_p0  ;;  %p1930_p4 = por %p1929_p3, %p1928_p2 }
 0x434   : > { %p1931_p5 = pnand %p1930_p4, %p1924_p1 }
 0x436   : > { %1934 = shalt.err (!%p1931_p5)
}
 0x437   : > { %s1935_s25 = scalar_lea.hbm %s2601_s15, %s2592_s11  ;;  %s1939_s6 = scalar_lea.hbm %s2653_s5, 8064 }
 0x438   : > { %p1936_p7 = scmp.ne.s32.totalorder %s2601_s15, %s1935_s25  ;;  %p1940_p10 = scmp.lt.u32.totalorder %s2601_s15, %s2653_s5 }
 0x439   : > { %p1941_p11 = scmp.lt.u32.totalorder %s1939_s6, %s1935_s25  ;;  %p1943_p0 = scmp.lt.u32.totalorder %s1935_s25, %s2601_s15 }
 0x43a   : > { %p1937_p8 = pnand %p1936_p7, %p1532_p12 }
 0x43b   : > { %p1942_p13 = por %p1941_p11, %p1940_p10 }
 0x43c   : > { %p1938_p9 = pneg %p1937_p8 }
 0x43d   : > { %p1944_p1 = por %p1943_p0, %p1942_p13 }
 0x43f   : > { %p1945_p2 = pnand %p1944_p1, %p1938_p9 }
 0x441   : > { %1948 = shalt.err (!%p1945_p2)
}
 0x442   : > { %s1986_s12 = smov 128   ;;  %s1987_s13 = smov 8  }
 0x443   : > { %1430 = dma.vmem_to_hbm [thread:$0]  (%p1532_p12), %s2604_s7, %s2592_s11, %s2601_s15, %s2587_s9, %s1986_s12, %s1986_s12, %s1987_s13  }
 0x444 PF: > { %p1741_p3 = scmp.ge.s32.totalorder %s1983_s21, 2  ;;  %s1439_s14 = sand.u32 1, %s1971_s18  }
 0x445   : > { %s1440_s28 = scalar_lea.sflag [#allocation3], %s1439_s14 }
 0x446   : > { %p1738_p4 = pnand %p1741_p3, %p2060_p6 }
 0x448   : > { %1966 = dma.done.wait (!%p1738_p4), %s1440_s28, 4096  }
 0x449   : > { %1968 = vsyncadd (!%p1738_p4), %s1440_s28, 4294963200  ;;  %p15_p5 = scmp.ge.s32.totalorder %s2043_s24, 4   ;;  %s2656_s18 = smov %s1975_s19 }
 0x44a   : > { %s2657_s19 = smov %s1979_s20  ;;  %s2658_s20 = smov %s2054_s27 }
 0x44b   : > { %s2659_s21 = smov %s2043_s24  ;;  %17 = sbr.rel (!%p15_p5) target bundleno = 3 (0x3), region = 75 }
 0x452   :  { %1445 = vsyncpa [#allocation3], 1 }
 0x453   :  { %1447 = vsyncpa [#allocation3 + $0x1], 1 }

</bundles_post_ra>
